<compile_context>
chip_gen: v7x
topology: tpu7x:2x2x1
jax: 0.10.0
libtpu: 0.0.40
codegen_flags: <defaults>
</compile_context>

<pallas_src>
import functools

import jax
import jax.numpy as jnp
import numpy as np
from jax.experimental import pallas as pl
from jax.experimental.pallas import tpu as pltpu


def _round_up(x, m):
    return ((x + m - 1) // m) * m


def _leaky_relu(x):
    # slope = 0.5 < 1, so LeakyReLU(x) == max(x, 0.5*x): 2 VALU ops instead of 3.
    return jnp.maximum(x, 0.5 * x)


def _make_kernel(n_stack):
    """Fused MLP kernel. Activations are laid out (features, batch_tile)."""

    def kernel(x_ref, w0_ref, b0_ref, w_ref, b_ref, wo_ref, bo_ref, o_ref):
        # Input tile (IN_P, tile_n); math in f32.
        h = x_ref[...].astype(jnp.float32)

        # Trunk layer 0 (ninput -> 10): tiny, keep f32 operands (accuracy, v5e-safe).
        h = jnp.dot(w0_ref[...], h, preferred_element_type=jnp.float32) + b0_ref[...]
        h = _leaky_relu(h)

        # Remaining trunk layers + fused head layer 1, all (Dp, Dp) x (Dp, tile_n).
        # Weights are bf16; cast the activation operand to bf16 right before the dot
        # (MXU fast path), accumulate in f32, bias + LeakyReLU in f32.
        for k in range(n_stack):
            h = jnp.dot(w_ref[k], h.astype(w_ref.dtype),
                        preferred_element_type=jnp.float32) + b_ref[k]
            h = _leaky_relu(h)

        # Fused (block-diagonal) head layer 2 — only out_p output rows, no activation,
        # result written directly (lane-dense, unmasked store).
        y = jnp.dot(wo_ref[...], h.astype(wo_ref.dtype),
                    preferred_element_type=jnp.float32) + bo_ref[...]
        o_ref[...] = y.astype(o_ref.dtype)

    return kernel


def init_params(key, nhidden, ndeg, max_neurons=100, ninput=6, dtype=jnp.float32):
    """Deterministic synthetic parameters matching the PyTorch module's shapes.

    Returns a flat list [w, b, w, b, ...] with weights shaped (in_features,
    out_features) and biases (1, out_features), in the order:
      trunk layers..., means.w1, means.b1, means.w2, means.b2,
      stds.w1, stds.b1, stds.w2, stds.b2
    """
    dims = np.linspace(10, max_neurons, nhidden)
    trunk_dims = [ninput, 10] + [int(dims[k + 1]) for k in range(nhidden - 1)]

    layer_shapes = []
    for i in range(len(trunk_dims) - 1):                 # trunk
        layer_shapes.append((trunk_dims[i], trunk_dims[i + 1]))
    layer_shapes.append((max_neurons, 50))               # means head
    layer_shapes.append((50, ndeg + 1))
    layer_shapes.append((max_neurons, 50))               # stds head
    layer_shapes.append((50, ndeg + 1))

    params = []
    for shape in layer_shapes:
        key, kw, kb = jax.random.split(key, 3)
        bound = 1.0 / np.sqrt(shape[0])
        w = jax.random.uniform(kw, shape, dtype=dtype, minval=-bound, maxval=bound)
        b = jax.random.uniform(kb, (1, shape[1]), dtype=dtype, minval=-bound, maxval=bound)
        params.extend([w, b])

    n_trunk_layers = len(trunk_dims) - 1
    return params, n_trunk_layers


def pack_params(params, n_trunk_layers, ndeg, param_dtype=jnp.bfloat16):
    """Pad, transpose, fuse-heads and pack parameters for the Pallas kernel.

    Returns (w0, b0, w_stack, b_stack, w_out, b_out):
      w0      : (Dp, IN_P)            first trunk layer, (out, in), f32, zero-padded
      b0      : (Dp, 1)               f32
      w_stack : (n_stack, Dp, Dp)     remaining trunk layers + fused head layer 1, bf16
      b_stack : (n_stack, Dp, 1)      f32
      w_out   : (OUT_P, Dp)           fused block-diagonal head layer 2, bf16
      b_out   : (OUT_P, 1)            f32
    Zero padding is exact (no change to the math); Dp is a multiple of 128 so all
    matmul/VPU operands are lane-aligned and unmasked.
    """
    nout = ndeg + 1
    nlayers = len(params) // 2
    ws = [np.asarray(params[2 * i], dtype=np.float32) for i in range(nlayers)]
    bs = [np.asarray(params[2 * i + 1], dtype=np.float32).reshape(-1) for i in range(nlayers)]

    trunk_w, trunk_b = ws[:n_trunk_layers], bs[:n_trunk_layers]
    m_w1, m_w2 = ws[n_trunk_layers], ws[n_trunk_layers + 1]
    m_b1, m_b2 = bs[n_trunk_layers], bs[n_trunk_layers + 1]
    s_w1, s_w2 = ws[n_trunk_layers + 2], ws[n_trunk_layers + 3]
    s_b1, s_b2 = bs[n_trunk_layers + 2], bs[n_trunk_layers + 3]

    head_hidden = m_w1.shape[1]                           # 50 in the module

    # Fused head layer 1: concat the two 50-wide layers -> (max_neurons, 100).
    h1_w = np.concatenate([m_w1, s_w1], axis=1)
    h1_b = np.concatenate([m_b1, s_b1], axis=0)
    # Fused head layer 2: block-diagonal (100, 2*nout).
    h2_w = np.zeros((2 * head_hidden, 2 * nout), dtype=np.float32)
    h2_w[:head_hidden, :nout] = m_w2
    h2_w[head_hidden:, nout:] = s_w2
    h2_b = np.concatenate([m_b2, s_b2], axis=0)

    stack_w = trunk_w[1:] + [h1_w]                        # all followed by LeakyReLU
    stack_b = trunk_b[1:] + [h1_b]

    dims = [w.shape[0] for w in stack_w] + [w.shape[1] for w in stack_w]
    dims.append(trunk_w[0].shape[1])
    dims.append(h2_w.shape[0])
    # Common padded feature width: multiple of 128 so every last-dim is lane-aligned.
    dp = max(128, _round_up(max(dims), 128))
    in_p = _round_up(trunk_w[0].shape[0], 8)
    out_p = _round_up(2 * nout, 16)                       # bf16-friendly sublane count

    w0 = np.zeros((dp, in_p), np.float32)
    b0 = np.zeros((dp, 1), np.float32)
    d_in0, d_out0 = trunk_w[0].shape
    w0[:d_out0, :d_in0] = trunk_w[0].T
    b0[:d_out0, 0] = trunk_b[0]

    n_stack = len(stack_w)
    w_stack = np.zeros((n_stack, dp, dp), np.float32)
    b_stack = np.zeros((n_stack, dp, 1), np.float32)
    for k, (w, b) in enumerate(zip(stack_w, stack_b)):
        d_in, d_out = w.shape
        w_stack[k, :d_out, :d_in] = w.T
        b_stack[k, :d_out, 0] = b

    w_out = np.zeros((out_p, dp), np.float32)
    b_out = np.zeros((out_p, 1), np.float32)
    w_out[:2 * nout, :2 * head_hidden] = h2_w.T
    b_out[:2 * nout, 0] = h2_b

    return (jnp.asarray(w0), jnp.asarray(b0),
            jnp.asarray(w_stack, dtype=param_dtype),
            jnp.asarray(b_stack),
            jnp.asarray(w_out, dtype=param_dtype),
            jnp.asarray(b_out))


def _choose_tile(n, tile_n):
    """Pick the batch tile (multiple of 128); aim for >=2 grid steps (v7x: 2 TCs)."""
    n128 = _round_up(max(n, 1), 128)
    if tile_n is None:
        tile_n = 1024          # large default to amortize ~0.35us per-grid-step overhead
    tile_n = max(128, _round_up(tile_n, 128))
    tile_n = min(tile_n, n128)
    if n128 >= 256 and (n128 + tile_n - 1) // tile_n < 2:
        tile_n = _round_up(n128 // 2, 128)
    return tile_n


@functools.partial(jax.jit, static_argnames=("ndeg", "tile_n"))
def mdn_emulator_forward(x, w0, b0, w_stack, b_stack, w_out, b_out, *, ndeg, tile_n=None):
    """Fused forward pass. Returns (p1d, logerrp1d), each (N, ndeg+1) in f32."""
    N, ninput = x.shape
    nout = ndeg + 1
    dp, in_p = w0.shape
    n_stack = w_stack.shape[0]
    out_p = w_out.shape[0]

    tile_n = _choose_tile(N, tile_n)
    assert tile_n >= 128 and tile_n % 128 == 0, "batch tile must be a multiple of 128"
    n_pad = _round_up(max(N, tile_n), tile_n)

    # Batch-on-lanes layout: (features, batch), zero-padded to (IN_P, N_pad).
    xt = jnp.zeros((in_p, n_pad), dtype=jnp.float32)
    xt = xt.at[:ninput, :N].set(x.T.astype(jnp.float32))

    kernel = _make_kernel(n_stack)

    out = pl.pallas_call(
        kernel,
        out_shape=jax.ShapeDtypeStruct((out_p, n_pad), jnp.float32),
        grid_spec=pltpu.PrefetchScalarGridSpec(
            num_scalar_prefetch=0,
            grid=(n_pad // tile_n,),
            in_specs=[
                pl.BlockSpec((in_p, tile_n), lambda i: (0, i)),
                # Parameters: full arrays, constant index_map -> VMEM-resident
                # across the (parallel) batch grid; no per-step re-DMA.
                pl.BlockSpec(tuple(w0.shape), lambda i: (0, 0)),
                pl.BlockSpec(tuple(b0.shape), lambda i: (0, 0)),
                pl.BlockSpec(tuple(w_stack.shape), lambda i: (0, 0, 0)),
                pl.BlockSpec(tuple(b_stack.shape), lambda i: (0, 0, 0)),
                pl.BlockSpec(tuple(w_out.shape), lambda i: (0, 0)),
                pl.BlockSpec(tuple(b_out.shape), lambda i: (0, 0)),
            ],
            out_specs=pl.BlockSpec((out_p, tile_n), lambda i: (0, i)),
        ),
        compiler_params=pltpu.CompilerParams(
            dimension_semantics=("parallel",),
        ),
    )(xt, w0, b0, w_stack, b_stack, w_out, b_out)

    # Un-fuse heads and return to (batch, features) layout.
    p1d = out[:nout, :N].T
    logerr = out[nout:2 * nout, :N].T
    return p1d, logerr


def reference_forward(x, params, n_trunk_layers):
    """Pure-JAX reference mirroring the PyTorch forward (unfused, unpadded, f32)."""
    idx = 0
    h = x.astype(jnp.float32)
    for _ in range(n_trunk_layers):
        w, b = params[idx], params[idx + 1]
        idx += 2
        h = _leaky_relu(h @ w + b)
    w1, b1, w2, b2 = params[idx:idx + 4]
    idx += 4
    p1d = _leaky_relu(h @ w1 + b1) @ w2 + b2
    w1, b1, w2, b2 = params[idx:idx + 4]
    logerr = _leaky_relu(h @ w1 + b1) @ w2 + b2
    return p1d, logerr


if __name__ == "__main__":
    # Small, deterministic configuration.
    nhidden = 4
    ndeg = 4
    max_neurons = 32
    ninput = 6
    batch = 200          # not a multiple of 128: exercises padding + 2-step grid

    key = jax.random.PRNGKey(0)
    key, kx = jax.random.split(key)

    params, n_trunk_layers = init_params(
        key, nhidden, ndeg, max_neurons=max_neurons, ninput=ninput
    )
    packed = pack_params(params, n_trunk_layers, ndeg)
    x = jax.random.normal(kx, (batch, ninput), dtype=jnp.float32)

    p1d, logerr = mdn_emulator_forward(x, *packed, ndeg=ndeg)
    p1d = jax.block_until_ready(p1d)
    logerr = jax.block_until_ready(logerr)

    # Sanity check against the pure-JAX f32 reference (bf16 MXU operands in the
    # kernel -> slightly widened tolerance).
    p1d_ref, logerr_ref = reference_forward(x, params, n_trunk_layers)
    assert p1d.shape == (batch, ndeg + 1)
    assert logerr.shape == (batch, ndeg + 1)
    np.testing.assert_allclose(np.asarray(p1d), np.asarray(p1d_ref), rtol=3e-2, atol=3e-2)
    np.testing.assert_allclose(np.asarray(logerr), np.asarray(logerr_ref), rtol=3e-2, atol=3e-2)

    print("KERNEL_OK")
</pallas_src>

<mosaic_0001>
module attributes {stable_mosaic.version = 11 : i64} {
  func.func @kernel(%arg0: i32, %arg1: memref<8x128xf32, #tpu.memory_space<vmem>>, %arg2: memref<128x8xf32, #tpu.memory_space<vmem>>, %arg3: memref<128x1xf32, #tpu.memory_space<vmem>>, %arg4: memref<4x128x128xbf16, #tpu.memory_space<vmem>>, %arg5: memref<4x128x1xf32, #tpu.memory_space<vmem>>, %arg6: memref<16x128xbf16, #tpu.memory_space<vmem>>, %arg7: memref<16x1xf32, #tpu.memory_space<vmem>>, %arg8: memref<16x128xf32, #tpu.memory_space<vmem>>) attributes {dimension_semantics = [#tpu.dimension_semantics<parallel>], iteration_bounds = array<i64: 2>, scalar_prefetch = 0 : i64, scratch_operands = 0 : i64, tpu.core_type = #tpu.core_type<tc>, window_params = [{transform_indices = @transform_0, window_bounds = array<i64: 8, 128>}, {pipeline_mode = #tpu.pipeline_mode<synchronous>, transform_indices = @transform_1, window_bounds = array<i64: 128, 8>}, {pipeline_mode = #tpu.pipeline_mode<synchronous>, transform_indices = @transform_2, window_bounds = array<i64: 128, 1>}, {pipeline_mode = #tpu.pipeline_mode<synchronous>, transform_indices = @transform_3, window_bounds = array<i64: 4, 128, 128>}, {pipeline_mode = #tpu.pipeline_mode<synchronous>, transform_indices = @transform_4, window_bounds = array<i64: 4, 128, 1>}, {pipeline_mode = #tpu.pipeline_mode<synchronous>, transform_indices = @transform_5, window_bounds = array<i64: 16, 128>}, {pipeline_mode = #tpu.pipeline_mode<synchronous>, transform_indices = @transform_6, window_bounds = array<i64: 16, 1>}, {transform_indices = @transform_7, window_bounds = array<i64: 16, 128>}]} {
    %c0 = arith.constant 0 : index
    %c0_0 = arith.constant 0 : index
    %0 = vector.load %arg1[%c0, %c0_0] : memref<8x128xf32, #tpu.memory_space<vmem>>, vector<8x128xf32>
    %c0_1 = arith.constant 0 : index
    %c0_2 = arith.constant 0 : index
    %1 = vector.load %arg2[%c0_1, %c0_2] : memref<128x8xf32, #tpu.memory_space<vmem>>, vector<128x8xf32>
    %cst = arith.constant dense<0.000000e+00> : vector<128x128xf32>
    %2 = tpu.matmul %1, %0, %cst {dimension_numbers = #tpu.dot_dimension_numbers<[1], [0], [0], [1], [0, 0, 1, 1], [], []>} : vector<128x8xf32>, vector<8x128xf32>, vector<128x128xf32> -> vector<128x128xf32>
    %c0_3 = arith.constant 0 : index
    %c0_4 = arith.constant 0 : index
    %3 = vector.load %arg3[%c0_3, %c0_4] : memref<128x1xf32, #tpu.memory_space<vmem>>, vector<128x1xf32>
    %4 = vector.broadcast %3 : vector<128x1xf32> to vector<128x128xf32>
    %5 = arith.addf %2, %4 : vector<128x128xf32>
    %cst_5 = arith.constant 5.000000e-01 : f32
    %6 = vector.broadcast %cst_5 : f32 to vector<128x128xf32>
    %7 = arith.mulf %6, %5 : vector<128x128xf32>
    %8 = arith.maximumf %5, %7 : vector<128x128xf32>
    %c0_6 = arith.constant 0 : index
    %c0_7 = arith.constant 0 : index
    %c0_8 = arith.constant 0 : index
    %9 = vector.load %arg4[%c0_6, %c0_7, %c0_8] : memref<4x128x128xbf16, #tpu.memory_space<vmem>>, vector<1x128x128xbf16>
    %10 = vector.shape_cast %9 : vector<1x128x128xbf16> to vector<128x128xbf16>
    %11 = arith.truncf %8 : vector<128x128xf32> to vector<128x128xbf16>
    %cst_9 = arith.constant dense<0.000000e+00> : vector<128x128xf32>
    %12 = tpu.matmul %10, %11, %cst_9 {dimension_numbers = #tpu.dot_dimension_numbers<[1], [0], [0], [1], [0, 0, 1, 1], [], []>} : vector<128x128xbf16>, vector<128x128xbf16>, vector<128x128xf32> -> vector<128x128xf32>
    %c0_10 = arith.constant 0 : index
    %c0_11 = arith.constant 0 : index
    %c0_12 = arith.constant 0 : index
    %13 = vector.load %arg5[%c0_10, %c0_11, %c0_12] : memref<4x128x1xf32, #tpu.memory_space<vmem>>, vector<1x128x1xf32>
    %14 = vector.shape_cast %13 : vector<1x128x1xf32> to vector<128x1xf32>
    %15 = vector.broadcast %14 : vector<128x1xf32> to vector<128x128xf32>
    %16 = arith.addf %12, %15 : vector<128x128xf32>
    %cst_13 = arith.constant 5.000000e-01 : f32
    %17 = vector.broadcast %cst_13 : f32 to vector<128x128xf32>
    %18 = arith.mulf %17, %16 : vector<128x128xf32>
    %19 = arith.maximumf %16, %18 : vector<128x128xf32>
    %c1 = arith.constant 1 : index
    %c0_14 = arith.constant 0 : index
    %c0_15 = arith.constant 0 : index
    %20 = vector.load %arg4[%c1, %c0_14, %c0_15] : memref<4x128x128xbf16, #tpu.memory_space<vmem>>, vector<1x128x128xbf16>
    %21 = vector.shape_cast %20 : vector<1x128x128xbf16> to vector<128x128xbf16>
    %22 = arith.truncf %19 : vector<128x128xf32> to vector<128x128xbf16>
    %cst_16 = arith.constant dense<0.000000e+00> : vector<128x128xf32>
    %23 = tpu.matmul %21, %22, %cst_16 {dimension_numbers = #tpu.dot_dimension_numbers<[1], [0], [0], [1], [0, 0, 1, 1], [], []>} : vector<128x128xbf16>, vector<128x128xbf16>, vector<128x128xf32> -> vector<128x128xf32>
    %c1_17 = arith.constant 1 : index
    %c0_18 = arith.constant 0 : index
    %c0_19 = arith.constant 0 : index
    %24 = vector.load %arg5[%c1_17, %c0_18, %c0_19] : memref<4x128x1xf32, #tpu.memory_space<vmem>>, vector<1x128x1xf32>
    %25 = vector.shape_cast %24 : vector<1x128x1xf32> to vector<128x1xf32>
    %26 = vector.broadcast %25 : vector<128x1xf32> to vector<128x128xf32>
    %27 = arith.addf %23, %26 : vector<128x128xf32>
    %cst_20 = arith.constant 5.000000e-01 : f32
    %28 = vector.broadcast %cst_20 : f32 to vector<128x128xf32>
    %29 = arith.mulf %28, %27 : vector<128x128xf32>
    %30 = arith.maximumf %27, %29 : vector<128x128xf32>
    %c2 = arith.constant 2 : index
    %c0_21 = arith.constant 0 : index
    %c0_22 = arith.constant 0 : index
    %31 = vector.load %arg4[%c2, %c0_21, %c0_22] : memref<4x128x128xbf16, #tpu.memory_space<vmem>>, vector<1x128x128xbf16>
    %32 = vector.shape_cast %31 : vector<1x128x128xbf16> to vector<128x128xbf16>
    %33 = arith.truncf %30 : vector<128x128xf32> to vector<128x128xbf16>
    %cst_23 = arith.constant dense<0.000000e+00> : vector<128x128xf32>
    %34 = tpu.matmul %32, %33, %cst_23 {dimension_numbers = #tpu.dot_dimension_numbers<[1], [0], [0], [1], [0, 0, 1, 1], [], []>} : vector<128x128xbf16>, vector<128x128xbf16>, vector<128x128xf32> -> vector<128x128xf32>
    %c2_24 = arith.constant 2 : index
    %c0_25 = arith.constant 0 : index
    %c0_26 = arith.constant 0 : index
    %35 = vector.load %arg5[%c2_24, %c0_25, %c0_26] : memref<4x128x1xf32, #tpu.memory_space<vmem>>, vector<1x128x1xf32>
    %36 = vector.shape_cast %35 : vector<1x128x1xf32> to vector<128x1xf32>
    %37 = vector.broadcast %36 : vector<128x1xf32> to vector<128x128xf32>
    %38 = arith.addf %34, %37 : vector<128x128xf32>
    %cst_27 = arith.constant 5.000000e-01 : f32
    %39 = vector.broadcast %cst_27 : f32 to vector<128x128xf32>
    %40 = arith.mulf %39, %38 : vector<128x128xf32>
    %41 = arith.maximumf %38, %40 : vector<128x128xf32>
    %c3 = arith.constant 3 : index
    %c0_28 = arith.constant 0 : index
    %c0_29 = arith.constant 0 : index
    %42 = vector.load %arg4[%c3, %c0_28, %c0_29] : memref<4x128x128xbf16, #tpu.memory_space<vmem>>, vector<1x128x128xbf16>
    %43 = vector.shape_cast %42 : vector<1x128x128xbf16> to vector<128x128xbf16>
    %44 = arith.truncf %41 : vector<128x128xf32> to vector<128x128xbf16>
    %cst_30 = arith.constant dense<0.000000e+00> : vector<128x128xf32>
    %45 = tpu.matmul %43, %44, %cst_30 {dimension_numbers = #tpu.dot_dimension_numbers<[1], [0], [0], [1], [0, 0, 1, 1], [], []>} : vector<128x128xbf16>, vector<128x128xbf16>, vector<128x128xf32> -> vector<128x128xf32>
    %c3_31 = arith.constant 3 : index
    %c0_32 = arith.constant 0 : index
    %c0_33 = arith.constant 0 : index
    %46 = vector.load %arg5[%c3_31, %c0_32, %c0_33] : memref<4x128x1xf32, #tpu.memory_space<vmem>>, vector<1x128x1xf32>
    %47 = vector.shape_cast %46 : vector<1x128x1xf32> to vector<128x1xf32>
    %48 = vector.broadcast %47 : vector<128x1xf32> to vector<128x128xf32>
    %49 = arith.addf %45, %48 : vector<128x128xf32>
    %cst_34 = arith.constant 5.000000e-01 : f32
    %50 = vector.broadcast %cst_34 : f32 to vector<128x128xf32>
    %51 = arith.mulf %50, %49 : vector<128x128xf32>
    %52 = arith.maximumf %49, %51 : vector<128x128xf32>
    %c0_35 = arith.constant 0 : index
    %c0_36 = arith.constant 0 : index
    %53 = vector.load %arg6[%c0_35, %c0_36] : memref<16x128xbf16, #tpu.memory_space<vmem>>, vector<16x128xbf16>
    %54 = arith.truncf %52 : vector<128x128xf32> to vector<128x128xbf16>
    %cst_37 = arith.constant dense<0.000000e+00> : vector<16x128xf32>
    %55 = tpu.matmul %53, %54, %cst_37 {dimension_numbers = #tpu.dot_dimension_numbers<[1], [0], [0], [1], [0, 0, 1, 1], [], []>} : vector<16x128xbf16>, vector<128x128xbf16>, vector<16x128xf32> -> vector<16x128xf32>
    %c0_38 = arith.constant 0 : index
    %c0_39 = arith.constant 0 : index
    %56 = vector.load %arg7[%c0_38, %c0_39] : memref<16x1xf32, #tpu.memory_space<vmem>>, vector<16x1xf32>
    %57 = vector.broadcast %56 : vector<16x1xf32> to vector<16x128xf32>
    %58 = arith.addf %55, %57 : vector<16x128xf32>
    %c0_40 = arith.constant 0 : index
    %c0_41 = arith.constant 0 : index
    %59 = vector.load %arg8[%c0_40, %c0_41] : memref<16x128xf32, #tpu.memory_space<vmem>>, vector<16x128xf32>
    tpu.vector_store %arg8[%c0_40, %c0_41], %58 {strides = array<i32>} : memref<16x128xf32, #tpu.memory_space<vmem>>, vector<16x128xf32>,
    return
  }
  func.func @transform_0(%arg0: i32) -> (i32, i32) {
    %c0_i32 = arith.constant 0 : i32
    %c0_i32_0 = arith.constant 0 : i32
    return %c0_i32, %arg0 : i32, i32
  }
  func.func @transform_1(%arg0: i32) -> (i32, i32) {
    %c0_i32 = arith.constant 0 : i32
    %c0_i32_0 = arith.constant 0 : i32
    %c0_i32_1 = arith.constant 0 : i32
    return %c0_i32, %c0_i32_0 : i32, i32
  }
  func.func @transform_2(%arg0: i32) -> (i32, i32) {
    %c0_i32 = arith.constant 0 : i32
    %c0_i32_0 = arith.constant 0 : i32
    %c0_i32_1 = arith.constant 0 : i32
    return %c0_i32, %c0_i32_0 : i32, i32
  }
  func.func @transform_3(%arg0: i32) -> (i32, i32, i32) {
    %c0_i32 = arith.constant 0 : i32
    %c0_i32_0 = arith.constant 0 : i32
    %c0_i32_1 = arith.constant 0 : i32
    %c0_i32_2 = arith.constant 0 : i32
    return %c0_i32, %c0_i32_0, %c0_i32_1 : i32, i32, i32
  }
  func.func @transform_4(%arg0: i32) -> (i32, i32, i32) {
    %c0_i32 = arith.constant 0 : i32
    %c0_i32_0 = arith.constant 0 : i32
    %c0_i32_1 = arith.constant 0 : i32
    %c0_i32_2 = arith.constant 0 : i32
    return %c0_i32, %c0_i32_0, %c0_i32_1 : i32, i32, i32
  }
  func.func @transform_5(%arg0: i32) -> (i32, i32) {
    %c0_i32 = arith.constant 0 : i32
    %c0_i32_0 = arith.constant 0 : i32
    %c0_i32_1 = arith.constant 0 : i32
    return %c0_i32, %c0_i32_0 : i32, i32
  }
  func.func @transform_6(%arg0: i32) -> (i32, i32) {
    %c0_i32 = arith.constant 0 : i32
    %c0_i32_0 = arith.constant 0 : i32
    %c0_i32_1 = arith.constant 0 : i32
    return %c0_i32, %c0_i32_0 : i32, i32
  }
  func.func @transform_7(%arg0: i32) -> (i32, i32) {
    %c0_i32 = arith.constant 0 : i32
    %c0_i32_0 = arith.constant 0 : i32
    return %c0_i32, %arg0 : i32, i32
  }
}

</mosaic_0001>

<bundles_post_ra>
// kernel: mdn_emulator_forward.1
= control target key start
LH: loop header
LB: loop body
LE: loop exit
PB: predicated region body
PF: predicated region fallthrough
CT: control target
= control target key end

     0   :  { %s2519_s24 = smov 0   ;;  %s2521_s25 = smov 0   ;;  %s2988_s0 = inlined_call_operand.vmem [shape: f32[8,256], index: 0, kind: input, shape index: {}]   ;;  %s2989_s1 = inlined_call_operand.vmem [shape: f32[128,8], index: 1, kind: input, shape index: {}]   ;;  %s2990_s2 = inlined_call_operand.vmem [shape: f32[128,1], index: 2, kind: input, shape index: {}]   ;;  %s2991_s3 = inlined_call_operand.vmem [shape: bf16[4,128,128], index: 3, kind: input, shape index: {}]   ;;  %s2992_s4 = inlined_call_operand.vmem [shape: f32[4,128,1], index: 4, kind: input, shape index: {}]   ;;  %s2993_s5 = inlined_call_operand.vmem [shape: bf16[16,128], index: 5, kind: input, shape index: {}]   ;;  %s2994_s6 = inlined_call_operand.vmem [shape: f32[16,1], index: 6, kind: input, shape index: {}]   ;;  %s2995_s7 = inlined_call_operand.vmem [shape: f32[16,256], index: 7, kind: output, shape index: {}]  }
   0x1   :  { %s2523_s26 = smov 0  }
   0x2 LB: > { %s2532_s27 = sadd.s32 4294967295, %s2474_s26   ;;  %s2534_s28 = sadd.s32 1, %s2474_s26   ;;  %s2474_s26 = sphi %s2523_s26, %s2999_s26   ;;  %s2470_s25 = sphi %s2521_s25, %s2998_s25   ;;  %s2466_s24 = sphi %s2519_s24, %s2997_s24  }
   0x3   : > { %s173_s29 = ssub.s32 %s2474_s26, %s2534_s28  ;;  %s176_s30 = sadd.s32 1, %s2470_s25 }
   0x4   : > { %p174_p0 = scmp.eq.s32.totalorder %s173_s29, 0  ;;  %p186_p1 = scmp.ne.s32.totalorder %s2470_s25, %s2466_s24 }
   0x5   : > { %p187_p2 = scmp.eq.s32.totalorder %s2532_s27, 1  ;;  %p1974_p3 = scmp.ge.s32.totalorder %s2474_s26, 1 }
   0x6   : > { %s2542_s8 = scalar_select %p174_p0, %s2470_s25, %s176_s30  }
   0x7   : > { %p2544_p4 = por %p187_p2, %p186_p1  ;;  %p236_p5 = scmp.lt.s32.totalorder %s2474_s26, 3 }
   0x9   : > { %p237_p6 = pnand %p1974_p3, %p236_p5 }
   0xa   : > { %v290_v0 = vld [vmem:[%s2990_s2 + $0x10] sm:$0xff] (!%p237_p6)  ;;  %v288_v1 = vld [vmem:[%s2990_s2] sm:$0xff] (!%p237_p6)  ;;  %p266_p7 = scmp.lt.s32.totalorder (!%p237_p6), %s2532_s27, 1  ;;  %vm384_vm0 = vcmask (!%p237_p6), 64512   ;;  %v2476_v2 = vmov (!%p237_p6), 0   ;;  %v291_v4 = vld [vmem:[%s2990_s2 + $0x18] sm:$0xff] (!%p237_p6) }
   0xb   : > { %240 = sbr.rel (%p237_p6) target bundleno = 1522 (0x5f2), region = 48  ;;  %2418 = vset.pattern.permute.xlu1 (!%p237_p6), %v2476_v2  ;;  %2417 = vset.pattern.permute.xlu0 (!%p237_p6), %v2476_v2  ;;  %v272_v3 = vld [vmem:[%s2989_s1] sm:$0xff] (!%p237_p6)  ;;  %v289_v5 = vld [vmem:[%s2990_s2 + $0x8] sm:$0xff] (!%p237_p6)  ;;  %v274_v10 = vld [vmem:[%s2989_s1 + $0x10] sm:$0xff] (!%p237_p6)  ;;  %vm2478_vm1 = vmmov (!%p237_p6), 0   ;;  %s263_s22 = sand.u32 (!%p237_p6), 1, %s2466_s24  }
   0xc   : > { %316 = vperm.xlu1 (!%p237_p6), %2418, %v290_v0   ;;  %306 = vperm.xlu0 (!%p237_p6), %2417, %v288_v1   ;;  %v273_v7 = vld [vmem:[%s2989_s1 + $0x8] sm:$0xff] (!%p237_p6)  ;;  %v292_v9 = vld [vmem:[%s2990_s2 + $0x20] sm:$0xff] (!%p237_p6)  ;;  %v275_v11 = vld [vmem:[%s2989_s1 + $0x18] sm:$0xff] (!%p237_p6)  ;;  %s1975_s23 = sshll.u32 (!%p237_p6), %s263_s22, 4 }
   0xd   : > { %2218 = vmatprep.mubr.msk.f32.mxu0 (!%p237_p6), %vm384_vm0, %v272_v3  ;;  %v293_v8 = vld [vmem:[%s2990_s2 + $0x28] sm:$0xff] (!%p237_p6)  ;;  %v295_v12 = vld [vmem:[%s2990_s2 + $0x38] sm:$0xff] (!%p237_p6)  ;;  %v294_v13 = vld [vmem:[%s2990_s2 + $0x30] sm:$0xff] (!%p237_p6) }
   0xe   : > { %v276_v14 = vld [vmem:[%s2989_s1 + $0x20] sm:$0xff] (!%p237_p6)  ;;  %v277_v15 = vld [vmem:[%s2989_s1 + $0x28] sm:$0xff] (!%p237_p6)  ;;  %v278_v18 = vld [vmem:[%s2989_s1 + $0x30] sm:$0xff] (!%p237_p6) }
   0xf   : > { %v297_v16 = vld [vmem:[%s2990_s2 + $0x48] sm:$0xff] (!%p237_p6)  ;;  %v296_v17 = vld [vmem:[%s2990_s2 + $0x40] sm:$0xff] (!%p237_p6)  ;;  %v279_v19 = vld [vmem:[%s2989_s1 + $0x38] sm:$0xff] (!%p237_p6) }
  0x10   : > { %321 = vperm.xlu1 (!%p237_p6), %2418, %v291_v4   ;;  %311 = vperm.xlu0 (!%p237_p6), %2417, %v289_v5   ;;  %v299_v20 = vld [vmem:[%s2990_s2 + $0x58] sm:$0xff] (!%p237_p6)  ;;  %v298_v21 = vld [vmem:[%s2990_s2 + $0x50] sm:$0xff] (!%p237_p6)  ;;  %v280_v22 = vld [vmem:[%s2989_s1 + $0x40] sm:$0xff] (!%p237_p6) }
  0x11   : > { %v281_v23 = vld [vmem:[%s2989_s1 + $0x48] sm:$0xff] (!%p237_p6)  ;;  %v300_v25 = vld [vmem:[%s2990_s2 + $0x60] sm:$0xff] (!%p237_p6)  ;;  %v282_v26 = vld [vmem:[%s2989_s1 + $0x50] sm:$0xff] (!%p237_p6) }
  0x12   : > { %s267_s16 = scalar_select %p266_p7, %s2532_s27, 1  ;;  %v301_v24 = vld [vmem:[%s2990_s2 + $0x68] sm:$0xff]  ;;  %v283_v27 = vld [vmem:[%s2989_s1 + $0x58] sm:$0xff]  ;;  %v302_v29 = vld [vmem:[%s2990_s2 + $0x70] sm:$0xff] }
  0x13   : > { %v303_v28 = vld [vmem:[%s2990_s2 + $0x78] sm:$0xff]  ;;  %v284_v30 = vld [vmem:[%s2989_s1 + $0x60] sm:$0xff]  ;;  %v285_v31 = vld [vmem:[%s2989_s1 + $0x68] sm:$0xff]  ;;  %s2123_s29 = sshll.u32 (%p2544_p4), %s2532_s27, 3 }
  0x14   : > { %s1976_s21 = sshll.u32 %s267_s16, 3  ;;  %331 = vperm.xlu1 %2418, %v293_v8   ;;  %326 = vperm.xlu0 %2417, %v292_v9   ;;  %v635_v32 = vld [vmem:[%s2992_s4 + $0x8] sm:$0xff]  ;;  %v634_v33 = vld [vmem:[%s2992_s4] sm:$0xff]  ;;  %v286_v34 = vld [vmem:[%s2989_s1 + $0x70] sm:$0xff]  ;;  %s1883_s10 = scalar_lea.vmem (%p2544_p4), %s2995_s7, %s2123_s29 }
  0x15   : > { %s269_s26 = scalar_lea.vmem %s2988_s0, %s1976_s21  ;;  %v287_v35 = vld [vmem:[%s2989_s1 + $0x78] sm:$0xff]  ;;  %v636_v37 = vld [vmem:[%s2992_s4 + $0x10] sm:$0xff]  ;;  %v639_v38 = vld [vmem:[%s2992_s4 + $0x28] sm:$0xff] }
  0x16   : > { %v271_v6 = vld [vmem:[%s269_s26] sm:$0xff]  ;;  %v637_v36 = vld [vmem:[%s2992_s4 + $0x18] sm:$0xff]  ;;  %v640_v41 = vld [vmem:[%s2992_s4 + $0x30] sm:$0xff]  ;;  %s265_s26 = scalar_lea.vmem [#allocation2], %s1975_s23 }
  0x17   : > { %2216 = vmatprep.subr.mxu0 %v271_v6  ;;  %v638_v39 = vld [vmem:[%s2992_s4 + $0x20] sm:$0xff]  ;;  %v641_v40 = vld [vmem:[%s2992_s4 + $0x38] sm:$0xff]  ;;  %v643_v42 = vld [vmem:[%s2992_s4 + $0x48] sm:$0xff] }
  0x18   : > { %2217 = vmatpush3.msra.mxu0 %v271_v6  ;;  %341 = vperm.xlu1 %2418, %v295_v12   ;;  %v642_v43 = vld [vmem:[%s2992_s4 + $0x40] sm:$0xff]  ;;  %v645_v44 = vld [vmem:[%s2992_s4 + $0x58] sm:$0xff]  ;;  %v644_v45 = vld [vmem:[%s2992_s4 + $0x50] sm:$0xff] }
  0x19   : > { %2219 = vmatmul.mubr.msk.f32.vlgmr.msra.gmra.mrb[0].mxu0 %vm384_vm0, %v273_v7  ;;  %336 = vperm.xlu0 %2417, %v294_v13   ;;  %v647_v46 = vld [vmem:[%s2992_s4 + $0x68] sm:$0xff]  ;;  %v646_v47 = vld [vmem:[%s2992_s4 + $0x60] sm:$0xff]  ;;  %v649_v48 = vld [vmem:[%s2992_s4 + $0x78] sm:$0xff] }
  0x1a   : > { %2221 = vmatprep.mubr.msk.f32.mxu0 %vm384_vm0, %v274_v10  ;;  %v648_v49 = vld [vmem:[%s2992_s4 + $0x70] sm:$0xff]  ;;  %v2018_v50 = vld [vmem:[%s2992_s4 + $0x88] sm:$0xff]  ;;  %v2017_v51 = vld [vmem:[%s2992_s4 + $0x80] sm:$0xff] }
  0x1b   : > { %v2020_v52 = vld [vmem:[%s2992_s4 + $0x98] sm:$0xff]  ;;  %v2019_v53 = vld [vmem:[%s2992_s4 + $0x90] sm:$0xff]  ;;  %v2022_v54 = vld [vmem:[%s2992_s4 + $0xa8] sm:$0xff] }
  0x1c   : > { %351 = vperm.xlu1 %2418, %v297_v16   ;;  %v2021_v55 = vld [vmem:[%s2992_s4 + $0xa0] sm:$0xff]  ;;  %v2024_v56 = vld [vmem:[%s2992_s4 + $0xb8] sm:$0xff]  ;;  %v2023_v57 = vld [vmem:[%s2992_s4 + $0xb0] sm:$0xff] }
  0x1d   : > { %2222 = vmatmul.mubr.msk.f32.gmra.mrb[2].mxu0 %vm384_vm0, %v275_v11  ;;  %346 = vperm.xlu0 %2417, %v296_v17   ;;  %v2026_v58 = vld [vmem:[%s2992_s4 + $0xc8] sm:$0xff]  ;;  %v2025_v59 = vld [vmem:[%s2992_s4 + $0xc0] sm:$0xff]  ;;  %v2028_v60 = vld [vmem:[%s2992_s4 + $0xd8] sm:$0xff] }
  0x1e   : > { %2224 = vmatprep.mubr.msk.f32.mxu0 %vm384_vm0, %v276_v14  ;;  %v2027_v61 = vld [vmem:[%s2992_s4 + $0xd0] sm:$0xff]  ;;  %v2030_v62 = vld [vmem:[%s2992_s4 + $0xe8] sm:$0xff]  ;;  %v2029_v63 = vld [vmem:[%s2992_s4 + $0xe0] sm:$0xff] }
  0x1f   : > { %v2032_v0 = vld [vmem:[%s2992_s4 + $0xf8] sm:$0xff]  ;;  %v2031_v1 = vld [vmem:[%s2992_s4 + $0xf0] sm:$0xff]  ;;  %v2058_v2 = vld [vmem:[%s2992_s4 + $0x108] sm:$0xff] }
  0x20   : > { %361 = vperm.xlu1 %2418, %v299_v20   ;;  %v2057_v3 = vld [vmem:[%s2992_s4 + $0x100] sm:$0xff]  ;;  %v2060_v4 = vld [vmem:[%s2992_s4 + $0x118] sm:$0xff]  ;;  %v2059_v5 = vld [vmem:[%s2992_s4 + $0x110] sm:$0xff] }
  0x21   : > { %2225 = vmatmul.mubr.msk.f32.gmra.mrb[4].mxu0 %vm384_vm0, %v277_v15  ;;  %356 = vperm.xlu0 %2417, %v298_v21   ;;  %v2062_v6 = vld [vmem:[%s2992_s4 + $0x128] sm:$0xff]  ;;  %v2061_v7 = vld [vmem:[%s2992_s4 + $0x120] sm:$0xff]  ;;  %v2064_v8 = vld [vmem:[%s2992_s4 + $0x138] sm:$0xff] }
  0x22   : > { %2227 = vmatprep.mubr.msk.f32.mxu0 %vm384_vm0, %v278_v18  ;;  %v2063_v9 = vld [vmem:[%s2992_s4 + $0x130] sm:$0xff]  ;;  %v2066_v10 = vld [vmem:[%s2992_s4 + $0x148] sm:$0xff]  ;;  %v2065_v11 = vld [vmem:[%s2992_s4 + $0x140] sm:$0xff] }
  0x23   : > { %v2068_v12 = vld [vmem:[%s2992_s4 + $0x158] sm:$0xff]  ;;  %v2067_v13 = vld [vmem:[%s2992_s4 + $0x150] sm:$0xff]  ;;  %v2070_v14 = vld [vmem:[%s2992_s4 + $0x168] sm:$0xff] }
  0x24   : > { %371 = vperm.xlu1 %2418, %v301_v24   ;;  %v2069_v15 = vld [vmem:[%s2992_s4 + $0x160] sm:$0xff]  ;;  %v2072_v16 = vld [vmem:[%s2992_s4 + $0x178] sm:$0xff]  ;;  %v2071_v17 = vld [vmem:[%s2992_s4 + $0x170] sm:$0xff] }
  0x25   : > { %2228 = vmatmul.mubr.msk.f32.gmra.mrb[6].mxu0 %vm384_vm0, %v279_v19  ;;  %366 = vperm.xlu0 %2417, %v300_v25   ;;  %v2098_v18 = vld [vmem:[%s2992_s4 + $0x188] sm:$0xff]  ;;  %v2097_v19 = vld [vmem:[%s2992_s4 + $0x180] sm:$0xff]  ;;  %v2100_v20 = vld [vmem:[%s2992_s4 + $0x198] sm:$0xff] }
  0x26   : > { %2230 = vmatprep.mubr.msk.f32.mxu0 %vm384_vm0, %v280_v22  ;;  %v2099_v21 = vld [vmem:[%s2992_s4 + $0x190] sm:$0xff]  ;;  %v2419_v22 = vld [vmem:[%s2991_s3] sm:$0xff]   ;;  %v2104_v25 = vld [vmem:[%s2992_s4 + $0x1b8] sm:$0xff] }
  0x27   : > { %v2101_v24 = vld [vmem:[%s2992_s4 + $0x1a0] sm:$0xff]  ;;  %2258 = vmatprep.mubr.bf16.mxu1 %v2419_v22 }
  0x28   : > { %381 = vperm.xlu1 %2418, %v303_v28   ;;  %v2105_v28 = vld [vmem:[%s2992_s4 + $0x1c0] sm:$0xff] }
  0x29   : > { %2231 = vmatmul.mubr.msk.f32.gmra.mrb[8].mxu0 %vm384_vm0, %v281_v23  ;;  %376 = vperm.xlu0 %2417, %v302_v29   ;;  %v2102_v23 = vld [vmem:[%s2992_s4 + $0x1a8] sm:$0xff]  ;;  %v2108_v29 = vld [vmem:[%s2992_s4 + $0x1d8] sm:$0xff] }
  0x2a   : > { %2233 = vmatprep.mubr.msk.f32.mxu0 %vm384_vm0, %v282_v26  ;;  %v2103_v26 = vld [vmem:[%s2992_s4 + $0x1b0] sm:$0xff] }
  0x2c   : > { %657 = vperm.xlu1 %2418, %v635_v32   ;;  %v2109_v32 = vld [vmem:[%s2992_s4 + $0x1e0] sm:$0xff] }
  0x2d   : > { %2234 = vmatmul.mubr.msk.f32.gmra.mrb[10].mxu0 %vm384_vm0, %v283_v27  ;;  %652 = vperm.xlu0 %2417, %v634_v33   ;;  %v2106_v27 = vld [vmem:[%s2992_s4 + $0x1c8] sm:$0xff]  ;;  %v2112_v33 = vld [vmem:[%s2992_s4 + $0x1f8] sm:$0xff] }
  0x2e   : > { %2236 = vmatprep.mubr.msk.f32.mxu0 %vm384_vm0, %v284_v30  ;;  %v2107_v30 = vld [vmem:[%s2992_s4 + $0x1d0] sm:$0xff] }
  0x30   : > { %667 = vperm.xlu1 %2418, %v637_v36   ;;  %v1814_v36 = vld [vmem:[%s2994_s6] sm:$0xff] }
  0x31   : > { %2237 = vmatmul.mubr.msk.f32.gmra.mrb[12].mxu0 %vm384_vm0, %v285_v31  ;;  %662 = vperm.xlu0 %2417, %v636_v37   ;;  %v2110_v31 = vld [vmem:[%s2992_s4 + $0x1e8] sm:$0xff] }
  0x32   : > { %2239 = vmatprep.mubr.msk.f32.mxu0 %vm384_vm0, %v286_v34  ;;  %v2111_v34 = vld [vmem:[%s2992_s4 + $0x1f0] sm:$0xff] }
  0x34   : > { %677 = vperm.xlu1 %2418, %v639_v38  }
  0x35   : > { %2240 = vmatmul.mubr.msk.f32.gmra.mrb[14].mxu0 %vm384_vm0, %v287_v35  ;;  %672 = vperm.xlu0 %2417, %v638_v39   ;;  %v1815_v35 = vld [vmem:[%s2994_s6 + $0x8] sm:$0xff] }
  0x38   : > { %687 = vperm.xlu1 %2418, %v641_v40  }
  0x39   : > { %682 = vperm.xlu0 %2417, %v640_v41  }
  0x3c   : > { %697 = vperm.xlu1 %2418, %v643_v42  }
  0x3d   : > { %692 = vperm.xlu0 %2417, %v642_v43  }
  0x40   : > { %707 = vperm.xlu1 %2418, %v645_v44  }
  0x41   : > { %702 = vperm.xlu0 %2417, %v644_v45  }
  0x44   : > { %717 = vperm.xlu1 %2418, %v647_v46  }
  0x45   : > { %712 = vperm.xlu0 %2417, %v646_v47  }
  0x48   : > { %727 = vperm.xlu1 %2418, %v649_v48  }
  0x49   : > { %722 = vperm.xlu0 %2417, %v648_v49  }
  0x4c   : > { %956 = vperm.xlu1 %2418, %v2018_v50  }
  0x4d   : > { %951 = vperm.xlu0 %2417, %v2017_v51  }
  0x50   : > { %966 = vperm.xlu1 %2418, %v2020_v52  }
  0x51   : > { %961 = vperm.xlu0 %2417, %v2019_v53  }
  0x54   : > { %976 = vperm.xlu1 %2418, %v2022_v54  }
  0x55   : > { %971 = vperm.xlu0 %2417, %v2021_v55  }
  0x58   : > { %986 = vperm.xlu1 %2418, %v2024_v56  }
  0x59   : > { %981 = vperm.xlu0 %2417, %v2023_v57  }
  0x5c   : > { %996 = vperm.xlu1 %2418, %v2026_v58  }
  0x5d   : > { %991 = vperm.xlu0 %2417, %v2025_v59  }
  0x60   : > { %1006 = vperm.xlu1 %2418, %v2028_v60  }
  0x61   : > { %1001 = vperm.xlu0 %2417, %v2027_v61  }
  0x64   : > { %1016 = vperm.xlu1 %2418, %v2030_v62  }
  0x65   : > { %1011 = vperm.xlu0 %2417, %v2029_v63  }
  0x68   : > { %1026 = vperm.xlu1 %2418, %v2032_v0  }
  0x69   : > { %1021 = vperm.xlu0 %2417, %v2031_v1  }
  0x6c   : > { %1255 = vperm.xlu1 %2418, %v2058_v2  }
  0x6d   : > { %1250 = vperm.xlu0 %2417, %v2057_v3  }
  0x70   : > { %1265 = vperm.xlu1 %2418, %v2060_v4  }
  0x71   : > { %1260 = vperm.xlu0 %2417, %v2059_v5  }
  0x74   : > { %1275 = vperm.xlu1 %2418, %v2062_v6  }
  0x75   : > { %1270 = vperm.xlu0 %2417, %v2061_v7  }
  0x78   : > { %1285 = vperm.xlu1 %2418, %v2064_v8  }
  0x79   : > { %1280 = vperm.xlu0 %2417, %v2063_v9  }
  0x7c   : > { %1295 = vperm.xlu1 %2418, %v2066_v10  }
  0x7d   : > { %1290 = vperm.xlu0 %2417, %v2065_v11  }
  0x80   : > { %1305 = vperm.xlu1 %2418, %v2068_v12  }
  0x81   : > { %1300 = vperm.xlu0 %2417, %v2067_v13  }
  0x84   : > { %1315 = vperm.xlu1 %2418, %v2070_v14  }
  0x85   : > { %1310 = vperm.xlu0 %2417, %v2069_v15  }
  0x88   : > { %1325 = vperm.xlu1 %2418, %v2072_v16  }
  0x89   : > { %1320 = vperm.xlu0 %2417, %v2071_v17  }
  0x8b   : > { %v317_v37 = vpop.permute.xlu1 %316  ;;  %v307_v38 = vpop.permute.xlu0 %306 }
  0x8c   : > { %1554 = vperm.xlu1 %2418, %v2098_v18  }
  0x8d   : > { %1549 = vperm.xlu0 %2417, %v2097_v19  }
  0x8f   : > { %v322_v39 = vpop.permute.xlu1 %321  ;;  %v312_v40 = vpop.permute.xlu0 %311 }
  0x90   : > { %1564 = vperm.xlu1 %2418, %v2100_v20  }
  0x91   : > { %1559 = vperm.xlu0 %2417, %v2099_v21  }
  0x93   : > { %v332_v41 = vpop.permute.xlu1 %331  ;;  %v327_v42 = vpop.permute.xlu0 %326 }
  0x94   : > { %1574 = vperm.xlu1 %2418, %v2102_v23  }
  0x95   : > { %1569 = vperm.xlu0 %2417, %v2101_v24  }
  0x97   : > { %v342_v48 = vpop.permute.xlu1 %341 }
  0x98   : > { %1584 = vperm.xlu1 %2418, %v2104_v25   ;;  %v337_v53 = vpop.permute.xlu0 %336 }
  0x99   : > { %1579 = vperm.xlu0 %2417, %v2103_v26  }
  0x9b   : > { %v352_v63 = vpop.permute.xlu1 %351 }
  0x9c   : > { %1594 = vperm.xlu1 %2418, %v2106_v27   ;;  %v347_v4 = vpop.permute.xlu0 %346 }
  0x9d   : > { %1589 = vperm.xlu0 %2417, %v2105_v28  }
  0x9f   : > { %v362_v14 = vpop.permute.xlu1 %361 }
  0xa0   : > { %1604 = vperm.xlu1 %2418, %v2108_v29   ;;  %v357_v20 = vpop.permute.xlu0 %356 }
  0xa1   : > { %1599 = vperm.xlu0 %2417, %v2107_v30  }
  0xa3   : > { %v372_v30 = vpop.permute.xlu1 %371 }
  0xa4   : > { %1614 = vperm.xlu1 %2418, %v2110_v31  }
  0xa5   : > { %1609 = vperm.xlu0 %2417, %v2109_v32  }
  0xa8   : > { %1624 = vperm.xlu1 %2418, %v2112_v33  }
  0xa9   : > { %1619 = vperm.xlu0 %2417, %v2111_v34  }
  0xac   : > { %1823 = vperm.xlu1 %2418, %v1815_v35   ;;  %v367_v35 = vpop.permute.xlu0 %366 }
  0xad   : > { %1818 = vperm.xlu0 %2417, %v1814_v36  }
  0xec   : > { %v2220_v43 = vpop.f32.mrb[0].mxu0 }
  0xed   : > { %v505_v44 = vadd.f32 %v2220_v43, %v312_v40  ;;  %v499_v45 = vpop.f32.mrb[1].mxu0 }
  0xee   : > { %v500_v47 = vadd.f32 %v499_v45, %v307_v38  ;;  %v382_v45 = vpop.permute.xlu1 %381 }
  0xef   : > { %v579_v46 = vmul.f32 0.5, %v505_v44 }
  0xf0   : > { %v2223_v49 = vpop.f32.mrb[2].mxu0  ;;  %v578_v51 = vmul.f32 0.5, %v500_v47 }
  0xf1   : > { %v595_v50 = vmax.f32 %v505_v44, %v579_v46  ;;  %v515_v52 = vadd.f32 %v2223_v49, %v322_v39  ;;  %v509_v54 = vpop.f32.mrb[3].mxu0 }
  0xf2   : > { %v594_v55 = vmax.f32 %v500_v47, %v578_v51  ;;  %v510_v57 = vadd.f32 %v509_v54, %v317_v37  ;;  %v377_v51 = vpop.permute.xlu0 %376 }
  0xf3   : > { %v581_v56 = vmul.f32 0.5, %v515_v52 }
  0xf4   : > { %v2226_v58 = vpop.f32.mrb[4].mxu0  ;;  %v580_v60 = vmul.f32 0.5, %v510_v57  ;;  %v626_v62 = vpack.c.bf16 %v595_v50, %v594_v55 }
  0xf5   : > { %v597_v59 = vmax.f32 %v515_v52, %v581_v56  ;;  %v525_v61 = vadd.f32 %v2226_v58, %v332_v41  ;;  %v519_v0 = vpop.f32.mrb[5].mxu0 }
  0xf6   : > { %v596_v1 = vmax.f32 %v510_v57, %v580_v60  ;;  %v520_v3 = vadd.f32 %v519_v0, %v327_v42  ;;  %2242 = vmatprep.subr.bf16.mxu1 %v626_v62  ;;  %v2423_v0 = vld [vmem:[%s2991_s3 + $0x20] sm:$0xff]  }
  0xf7   : > { %v583_v2 = vmul.f32 0.5, %v525_v61  ;;  %2243 = vmatpush3.bf16.msra.mxu1 %v626_v62  ;;  %v2421_v62 = vld [vmem:[%s2991_s3 + $0x10] sm:$0xff]  }
  0xf8   : > { %v2229_v5 = vpop.f32.mrb[6].mxu0  ;;  %v582_v7 = vmul.f32 0.5, %v520_v3  ;;  %v627_v9 = vpack.c.bf16 %v597_v59, %v596_v1  ;;  %v2424_v1 = vld [vmem:[%s2991_s3 + $0x28] sm:$0xff]  }
  0xf9   : > { %v599_v6 = vmax.f32 %v525_v61, %v583_v2  ;;  %v535_v8 = vadd.f32 %v2229_v5, %v342_v48  ;;  %v529_v10 = vpop.f32.mrb[7].mxu0  ;;  %v2420_v61 = vld [vmem:[%s2991_s3 + $0x8] sm:$0xff]   ;;  %v2425_v2 = vld [vmem:[%s2991_s3 + $0x30] sm:$0xff]   ;;  %v653_v5 = vpop.permute.xlu0 %652 }
  0xfa   : > { %v598_v11 = vmax.f32 %v520_v3, %v582_v7  ;;  %v530_v13 = vadd.f32 %v529_v10, %v337_v53  ;;  %2244 = vmatprep.subr.bf16.mxu1 %v627_v9  ;;  %v2426_v3 = vld [vmem:[%s2991_s3 + $0x38] sm:$0xff]  }
  0xfb   : > { %v585_v12 = vmul.f32 0.5, %v535_v8  ;;  %2245 = vmatpush3.bf16.msra.mxu1 %v627_v9 }
  0xfc   : > { %v2232_v15 = vpop.f32.mrb[8].mxu0  ;;  %v584_v17 = vmul.f32 0.5, %v530_v13  ;;  %v628_v19 = vpack.c.bf16 %v599_v6, %v598_v11  ;;  %v658_v6 = vpop.permute.xlu1 %657 }
  0xfd   : > { %v601_v16 = vmax.f32 %v535_v8, %v585_v12  ;;  %v545_v18 = vadd.f32 %v2232_v15, %v352_v63  ;;  %v539_v21 = vpop.f32.mrb[9].mxu0  ;;  %v2422_v63 = vld [vmem:[%s2991_s3 + $0x18] sm:$0xff]   ;;  %v663_v7 = vpop.permute.xlu0 %662 }
  0xfe   : > { %v600_v22 = vmax.f32 %v530_v13, %v584_v17  ;;  %v540_v24 = vadd.f32 %v539_v21, %v347_v4  ;;  %2246 = vmatprep.subr.bf16.mxu1 %v628_v19  ;;  %v2427_v4 = vld [vmem:[%s2991_s3 + $0x40] sm:$0xff]  }
  0xff   : > { %v587_v23 = vmul.f32 0.5, %v545_v18  ;;  %2247 = vmatpush3.bf16.msra.mxu1 %v628_v19  ;;  %2290 = vmatprep.mubr.bf16.mxu0 %v2427_v4 }
 0x100   : > { %v2235_v25 = vpop.f32.mrb[10].mxu0  ;;  %v586_v27 = vmul.f32 0.5, %v540_v24  ;;  %v629_v29 = vpack.c.bf16 %v601_v16, %v600_v22  ;;  %v668_v8 = vpop.permute.xlu1 %667 }
 0x101   : > { %v603_v26 = vmax.f32 %v545_v18, %v587_v23  ;;  %v555_v28 = vadd.f32 %v2235_v25, %v362_v14  ;;  %v549_v31 = vpop.f32.mrb[11].mxu0  ;;  %v673_v9 = vpop.permute.xlu0 %672 }
 0x102   : > { %v602_v32 = vmax.f32 %v540_v24, %v586_v27  ;;  %v550_v34 = vadd.f32 %v549_v31, %v357_v20  ;;  %2248 = vmatprep.subr.bf16.mxu1 %v629_v29 }
 0x103   : > { %v589_v33 = vmul.f32 0.5, %v555_v28  ;;  %2249 = vmatpush3.bf16.msra.mxu1 %v629_v29 }
 0x104   : > { %v2238_v36 = vpop.f32.mrb[12].mxu0  ;;  %v588_v38 = vmul.f32 0.5, %v550_v34  ;;  %v630_v40 = vpack.c.bf16 %v603_v26, %v602_v32  ;;  %v678_v10 = vpop.permute.xlu1 %677 }
 0x105   : > { %v605_v37 = vmax.f32 %v555_v28, %v589_v33  ;;  %v565_v39 = vadd.f32 %v2238_v36, %v372_v30  ;;  %v559_v41 = vpop.f32.mrb[13].mxu0  ;;  %v683_v11 = vpop.permute.xlu0 %682 }
 0x106   : > { %v604_v42 = vmax.f32 %v550_v34, %v588_v38  ;;  %v560_v44 = vadd.f32 %v559_v41, %v367_v35  ;;  %2250 = vmatprep.subr.bf16.mxu1 %v630_v40 }
 0x107   : > { %v591_v43 = vmul.f32 0.5, %v565_v39  ;;  %2251 = vmatpush3.bf16.msra.mxu1 %v630_v40 }
 0x108   : > { %v2241_v46 = vpop.f32.mrb[14].mxu0  ;;  %v590_v48 = vmul.f32 0.5, %v560_v44  ;;  %v631_v50 = vpack.c.bf16 %v605_v37, %v604_v42  ;;  %v688_v15 = vpop.permute.xlu1 %687 }
 0x109   : > { %v607_v47 = vmax.f32 %v565_v39, %v591_v43  ;;  %v575_v49 = vadd.f32 %v2241_v46, %v382_v45  ;;  %v569_v52 = vpop.f32.mrb[15].mxu0  ;;  %v693_v24 = vpop.permute.xlu0 %692 }
 0x10a   : > { %v606_v53 = vmax.f32 %v560_v44, %v590_v48  ;;  %v570_v55 = vadd.f32 %v569_v52, %v377_v51  ;;  %2252 = vmatprep.subr.bf16.mxu1 %v631_v50 }
 0x10b   : > { %v593_v54 = vmul.f32 0.5, %v575_v49  ;;  %2253 = vmatpush3.bf16.msra.mxu1 %v631_v50 }
 0x10c   : > { %v592_v57 = vmul.f32 0.5, %v570_v55  ;;  %v632_v58 = vpack.c.bf16 %v607_v47, %v606_v53  ;;  %v698_v28 = vpop.permute.xlu1 %697 }
 0x10d   : > { %v609_v56 = vmax.f32 %v575_v49, %v593_v54  ;;  %v703_v41 = vpop.permute.xlu0 %702 }
 0x10e   : > { %v608_v59 = vmax.f32 %v570_v55, %v592_v57  ;;  %2254 = vmatprep.subr.bf16.mxu1 %v632_v58 }
 0x10f   : > { %2255 = vmatpush3.bf16.msra.mxu1 %v632_v58 }
 0x110   : > { %v633_v60 = vpack.c.bf16 %v609_v56, %v608_v59  ;;  %v708_v45 = vpop.permute.xlu1 %707 }
 0x111   : > { %v713_v55 = vpop.permute.xlu0 %712 }
 0x112   : > { %2256 = vmatprep.subr.bf16.mxu1 %v633_v60 }
 0x113   : > { %2257 = vmatpush3.bf16.msra.mxu1 %v633_v60 }
 0x116   : > { %2259 = vmatmul.mubr.bf16.vlgmr.msra.gmra.mrb[0].mxu1 %v2420_v61 }
 0x117   : > { %2262 = vmatprep.mubr.bf16.mxu1 %v2421_v62  ;;  %v718_v62 = vpop.permute.xlu1 %717 }
 0x11e   : > { %2263 = vmatmul.mubr.bf16.gmra.mrb[4].mxu1 %v2422_v63 }
 0x11f   : > { %2266 = vmatprep.mubr.bf16.mxu1 %v2423_v0 }
 0x126   : > { %2267 = vmatmul.mubr.bf16.gmra.mrb[8].mxu1 %v2424_v1 }
 0x127   : > { %2270 = vmatprep.mubr.bf16.mxu1 %v2425_v2 }
 0x12e   : > { %2271 = vmatmul.mubr.bf16.gmra.mrb[12].mxu1 %v2426_v3 }
 0x1e9   : > { %v2260_v12 = vpop.f32.mrb[0].mxu1 }
 0x1ea   : > { %v821_v13 = vadd.f32 %v2260_v12, %v663_v7  ;;  %v812_v14 = vpop.f32.mrb[1].mxu1  ;;  %v728_v12 = vpop.permute.xlu1 %727 }
 0x1eb   : > { %v813_v16 = vadd.f32 %v812_v14, %v653_v5  ;;  %v2261_v17 = vpop.f32.mrb[2].mxu1  ;;  %v723_v5 = vpop.permute.xlu0 %722 }
 0x1ec   : > { %v877_v18 = vmul.f32 0.5, %v821_v13  ;;  %v824_v19 = vadd.f32 %v2261_v17, %v668_v8  ;;  %v815_v20 = vpop.f32.mrb[3].mxu1 }
 0x1ed   : > { %v875_v21 = vmul.f32 0.5, %v813_v16  ;;  %v816_v22 = vadd.f32 %v815_v20, %v658_v6 }
 0x1ee   : > { %v878_v23 = vmul.f32 0.5, %v824_v19  ;;  %v893_v26 = vmax.f32 %v821_v13, %v877_v18 }
 0x1ef   : > { %v876_v25 = vmul.f32 0.5, %v816_v22  ;;  %v891_v29 = vmax.f32 %v813_v16, %v875_v21 }
 0x1f0   : > { %v894_v27 = vmax.f32 %v824_v19, %v878_v23 }
 0x1f1   : > { %v892_v30 = vmax.f32 %v816_v22, %v876_v25  ;;  %v2264_v31 = vpop.f32.mrb[4].mxu1 }
 0x1f2   : > { %v837_v32 = vadd.f32 %v2264_v31, %v683_v11  ;;  %v828_v33 = vpop.f32.mrb[5].mxu1  ;;  %v925_v34 = vpack.c.bf16 %v894_v27, %v893_v26  ;;  %v2430_v31 = vld [vmem:[%s2991_s3 + $0x58] sm:$0xff]  }
 0x1f3   : > { %v829_v35 = vadd.f32 %v828_v33, %v673_v9  ;;  %v2265_v36 = vpop.f32.mrb[6].mxu1  ;;  %v924_v37 = vpack.c.bf16 %v892_v30, %v891_v29  ;;  %v2428_v29 = vld [vmem:[%s2991_s3 + $0x48] sm:$0xff]   ;;  %v2429_v30 = vld [vmem:[%s2991_s3 + $0x50] sm:$0xff]  }
 0x1f4   : > { %v881_v38 = vmul.f32 0.5, %v837_v32  ;;  %v840_v39 = vadd.f32 %v2265_v36, %v688_v15  ;;  %v831_v40 = vpop.f32.mrb[7].mxu1  ;;  %v2432_v33 = vld [vmem:[%s2991_s3 + $0x68] sm:$0xff]   ;;  %v2435_v36 = vld [vmem:[%s2991_s3 + $0x80] sm:$0xff]  }
 0x1f5   : > { %v879_v42 = vmul.f32 0.5, %v829_v35  ;;  %v832_v43 = vadd.f32 %v831_v40, %v678_v10  ;;  %2274 = vmatprep.subr.bf16.mxu0 %v924_v37  ;;  %2322 = vmatprep.mubr.bf16.mxu1 %v2435_v36 }
 0x1f6   : > { %v882_v44 = vmul.f32 0.5, %v840_v39  ;;  %2275 = vmatpush3.bf16.msra.mxu0 %v924_v37  ;;  %v897_v47 = vmax.f32 %v837_v32, %v881_v38  ;;  %v2431_v32 = vld [vmem:[%s2991_s3 + $0x60] sm:$0xff]   ;;  %v952_v37 = vpop.permute.xlu0 %951  ;;  %v957_v38 = vpop.permute.xlu1 %956 }
 0x1f7   : > { %v880_v46 = vmul.f32 0.5, %v832_v43  ;;  %2276 = vmatprep.subr.bf16.mxu0 %v925_v34  ;;  %v895_v49 = vmax.f32 %v829_v35, %v879_v42  ;;  %v2434_v35 = vld [vmem:[%s2991_s3 + $0x78] sm:$0xff]  }
 0x1f8   : > { %v898_v48 = vmax.f32 %v840_v39, %v882_v44 }
 0x1f9   : > { %v896_v50 = vmax.f32 %v832_v43, %v880_v46  ;;  %v2268_v51 = vpop.f32.mrb[8].mxu1 }
 0x1fa   : > { %v853_v52 = vadd.f32 %v2268_v51, %v703_v41  ;;  %v844_v53 = vpop.f32.mrb[9].mxu1  ;;  %2277 = vmatpush3.bf16.msra.mxu0 %v925_v34  ;;  %v927_v54 = vpack.c.bf16 %v898_v48, %v897_v47  ;;  %v2433_v34 = vld [vmem:[%s2991_s3 + $0x70] sm:$0xff]   ;;  %v962_v39 = vpop.permute.xlu0 %961 }
 0x1fb   : > { %v845_v56 = vadd.f32 %v844_v53, %v693_v24  ;;  %v2269_v57 = vpop.f32.mrb[10].mxu1  ;;  %v926_v58 = vpack.c.bf16 %v896_v50, %v895_v49  ;;  %v967_v40 = vpop.permute.xlu1 %966 }
 0x1fc   : > { %v885_v59 = vmul.f32 0.5, %v853_v52  ;;  %v856_v60 = vadd.f32 %v2269_v57, %v708_v45  ;;  %v847_v61 = vpop.f32.mrb[11].mxu1 }
 0x1fd   : > { %v883_v63 = vmul.f32 0.5, %v845_v56  ;;  %v848_v0 = vadd.f32 %v847_v61, %v698_v28  ;;  %2278 = vmatprep.subr.bf16.mxu0 %v926_v58 }
 0x1fe   : > { %v886_v1 = vmul.f32 0.5, %v856_v60  ;;  %2279 = vmatpush3.bf16.msra.mxu0 %v926_v58  ;;  %v901_v3 = vmax.f32 %v853_v52, %v885_v59  ;;  %v972_v41 = vpop.permute.xlu0 %971 }
 0x1ff   : > { %v884_v2 = vmul.f32 0.5, %v848_v0  ;;  %2280 = vmatprep.subr.bf16.mxu0 %v927_v54  ;;  %v899_v6 = vmax.f32 %v845_v56, %v883_v63  ;;  %v977_v42 = vpop.permute.xlu1 %976 }
 0x200   : > { %v902_v4 = vmax.f32 %v856_v60, %v886_v1 }
 0x201   : > { %v900_v7 = vmax.f32 %v848_v0, %v884_v2  ;;  %v2272_v8 = vpop.f32.mrb[12].mxu1 }
 0x202   : > { %v869_v9 = vadd.f32 %v2272_v8, %v723_v5  ;;  %v860_v10 = vpop.f32.mrb[13].mxu1  ;;  %2281 = vmatpush3.bf16.msra.mxu0 %v927_v54  ;;  %v929_v11 = vpack.c.bf16 %v902_v4, %v901_v3  ;;  %v982_v43 = vpop.permute.xlu0 %981 }
 0x203   : > { %v861_v13 = vadd.f32 %v860_v10, %v713_v55  ;;  %v2273_v14 = vpop.f32.mrb[14].mxu1  ;;  %v928_v15 = vpack.c.bf16 %v900_v7, %v899_v6  ;;  %v987_v47 = vpop.permute.xlu1 %986 }
 0x204   : > { %v889_v16 = vmul.f32 0.5, %v869_v9  ;;  %v872_v17 = vadd.f32 %v2273_v14, %v728_v12  ;;  %v863_v18 = vpop.f32.mrb[15].mxu1 }
 0x205   : > { %v887_v19 = vmul.f32 0.5, %v861_v13  ;;  %v864_v20 = vadd.f32 %v863_v18, %v718_v62  ;;  %2282 = vmatprep.subr.bf16.mxu0 %v928_v15 }
 0x206   : > { %v890_v21 = vmul.f32 0.5, %v872_v17  ;;  %2283 = vmatpush3.bf16.msra.mxu0 %v928_v15  ;;  %v905_v23 = vmax.f32 %v869_v9, %v889_v16  ;;  %v992_v56 = vpop.permute.xlu0 %991 }
 0x207   : > { %v888_v22 = vmul.f32 0.5, %v864_v20  ;;  %2284 = vmatprep.subr.bf16.mxu0 %v929_v11  ;;  %v903_v25 = vmax.f32 %v861_v13, %v887_v19  ;;  %v997_v60 = vpop.permute.xlu1 %996 }
 0x208   : > { %v906_v24 = vmax.f32 %v872_v17, %v890_v21 }
 0x209   : > { %v904_v26 = vmax.f32 %v864_v20, %v888_v22 }
 0x20a   : > { %2285 = vmatpush3.bf16.msra.mxu0 %v929_v11  ;;  %v931_v27 = vpack.c.bf16 %v906_v24, %v905_v23  ;;  %v1002_v9 = vpop.permute.xlu0 %1001 }
 0x20b   : > { %v930_v28 = vpack.c.bf16 %v904_v26, %v903_v25  ;;  %v1007_v13 = vpop.permute.xlu1 %1006 }
 0x20d   : > { %2286 = vmatprep.subr.bf16.mxu0 %v930_v28 }
 0x20e   : > { %2287 = vmatpush3.bf16.msra.mxu0 %v930_v28  ;;  %v1012_v23 = vpop.permute.xlu0 %1011 }
 0x20f   : > { %2288 = vmatprep.subr.bf16.mxu0 %v931_v27 }
 0x212   : > { %2289 = vmatpush3.bf16.msra.mxu0 %v931_v27 }
 0x215   : > { %2291 = vmatmul.mubr.bf16.vlgmr.msra.gmra.mrb[16].mxu0 %v2428_v29 }
 0x216   : > { %2294 = vmatprep.mubr.bf16.mxu0 %v2429_v30  ;;  %v1017_v30 = vpop.permute.xlu1 %1016 }
 0x21d   : > { %2295 = vmatmul.mubr.bf16.gmra.mrb[20].mxu0 %v2430_v31 }
 0x21e   : > { %2298 = vmatprep.mubr.bf16.mxu0 %v2431_v32 }
 0x225   : > { %2299 = vmatmul.mubr.bf16.gmra.mrb[24].mxu0 %v2432_v33 }
 0x226   : > { %2302 = vmatprep.mubr.bf16.mxu0 %v2433_v34 }
 0x22d   : > { %2303 = vmatmul.mubr.bf16.gmra.mrb[28].mxu0 %v2434_v35 }
 0x2e8   : > { %v2292_v44 = vpop.f32.mrb[16].mxu0 }
 0x2e9   : > { %v1120_v45 = vadd.f32 %v2292_v44, %v962_v39  ;;  %v1111_v46 = vpop.f32.mrb[17].mxu0  ;;  %v1027_v44 = vpop.permute.xlu1 %1026 }
 0x2ea   : > { %v1112_v48 = vadd.f32 %v1111_v46, %v952_v37  ;;  %v2293_v49 = vpop.f32.mrb[18].mxu0  ;;  %v1022_v37 = vpop.permute.xlu0 %1021 }
 0x2eb   : > { %v1176_v50 = vmul.f32 0.5, %v1120_v45  ;;  %v1123_v51 = vadd.f32 %v2293_v49, %v967_v40  ;;  %v1114_v52 = vpop.f32.mrb[19].mxu0 }
 0x2ec   : > { %v1174_v53 = vmul.f32 0.5, %v1112_v48  ;;  %v1115_v54 = vadd.f32 %v1114_v52, %v957_v38 }
 0x2ed   : > { %v1177_v55 = vmul.f32 0.5, %v1123_v51  ;;  %v1192_v58 = vmax.f32 %v1120_v45, %v1176_v50 }
 0x2ee   : > { %v1175_v57 = vmul.f32 0.5, %v1115_v54  ;;  %v1190_v61 = vmax.f32 %v1112_v48, %v1174_v53 }
 0x2ef   : > { %v1193_v59 = vmax.f32 %v1123_v51, %v1177_v55 }
 0x2f0   : > { %v1191_v62 = vmax.f32 %v1115_v54, %v1175_v57  ;;  %v2296_v63 = vpop.f32.mrb[20].mxu0 }
 0x2f1   : > { %v1136_v0 = vadd.f32 %v2296_v63, %v982_v43  ;;  %v1127_v1 = vpop.f32.mrb[21].mxu0  ;;  %v1224_v2 = vpack.c.bf16 %v1193_v59, %v1192_v58  ;;  %v2438_v63 = vld [vmem:[%s2991_s3 + $0x98] sm:$0xff]  }
 0x2f2   : > { %v1128_v3 = vadd.f32 %v1127_v1, %v972_v41  ;;  %v2297_v4 = vpop.f32.mrb[22].mxu0  ;;  %v1223_v5 = vpack.c.bf16 %v1191_v62, %v1190_v61  ;;  %v2436_v61 = vld [vmem:[%s2991_s3 + $0x88] sm:$0xff]   ;;  %v2437_v62 = vld [vmem:[%s2991_s3 + $0x90] sm:$0xff]  }
 0x2f3   : > { %v1180_v6 = vmul.f32 0.5, %v1136_v0  ;;  %v1139_v7 = vadd.f32 %v2297_v4, %v987_v47  ;;  %v1130_v8 = vpop.f32.mrb[23].mxu0  ;;  %v2440_v1 = vld [vmem:[%s2991_s3 + $0xa8] sm:$0xff]   ;;  %v2443_v4 = vld [vmem:[%s2991_s3 + $0xc0] sm:$0xff]  }
 0x2f4   : > { %v1178_v10 = vmul.f32 0.5, %v1128_v3  ;;  %v1131_v11 = vadd.f32 %v1130_v8, %v977_v42  ;;  %2306 = vmatprep.subr.bf16.mxu1 %v1223_v5  ;;  %2354 = vmatprep.mubr.bf16.mxu0 %v2443_v4 }
 0x2f5   : > { %v1181_v12 = vmul.f32 0.5, %v1139_v7  ;;  %2307 = vmatpush3.bf16.msra.mxu1 %v1223_v5  ;;  %v1196_v15 = vmax.f32 %v1136_v0, %v1180_v6  ;;  %v2439_v0 = vld [vmem:[%s2991_s3 + $0xa0] sm:$0xff]   ;;  %v1251_v5 = vpop.permute.xlu0 %1250  ;;  %v1256_v6 = vpop.permute.xlu1 %1255 }
 0x2f6   : > { %v1179_v14 = vmul.f32 0.5, %v1131_v11  ;;  %2308 = vmatprep.subr.bf16.mxu1 %v1224_v2  ;;  %v1194_v17 = vmax.f32 %v1128_v3, %v1178_v10  ;;  %v2442_v3 = vld [vmem:[%s2991_s3 + $0xb8] sm:$0xff]  }
 0x2f7   : > { %v1197_v16 = vmax.f32 %v1139_v7, %v1181_v12 }
 0x2f8   : > { %v1195_v18 = vmax.f32 %v1131_v11, %v1179_v14  ;;  %v2300_v19 = vpop.f32.mrb[24].mxu0 }
 0x2f9   : > { %v1152_v20 = vadd.f32 %v2300_v19, %v1002_v9  ;;  %v1143_v21 = vpop.f32.mrb[25].mxu0  ;;  %2309 = vmatpush3.bf16.msra.mxu1 %v1224_v2  ;;  %v1226_v22 = vpack.c.bf16 %v1197_v16, %v1196_v15  ;;  %v2441_v2 = vld [vmem:[%s2991_s3 + $0xb0] sm:$0xff]   ;;  %v1261_v7 = vpop.permute.xlu0 %1260 }
 0x2fa   : > { %v1144_v24 = vadd.f32 %v1143_v21, %v992_v56  ;;  %v2301_v25 = vpop.f32.mrb[26].mxu0  ;;  %v1225_v26 = vpack.c.bf16 %v1195_v18, %v1194_v17  ;;  %v1266_v8 = vpop.permute.xlu1 %1265 }
 0x2fb   : > { %v1184_v27 = vmul.f32 0.5, %v1152_v20  ;;  %v1155_v28 = vadd.f32 %v2301_v25, %v1007_v13  ;;  %v1146_v29 = vpop.f32.mrb[27].mxu0 }
 0x2fc   : > { %v1182_v31 = vmul.f32 0.5, %v1144_v24  ;;  %v1147_v32 = vadd.f32 %v1146_v29, %v997_v60  ;;  %2310 = vmatprep.subr.bf16.mxu1 %v1225_v26 }
 0x2fd   : > { %v1185_v33 = vmul.f32 0.5, %v1155_v28  ;;  %2311 = vmatpush3.bf16.msra.mxu1 %v1225_v26  ;;  %v1200_v35 = vmax.f32 %v1152_v20, %v1184_v27  ;;  %v1271_v9 = vpop.permute.xlu0 %1270 }
 0x2fe   : > { %v1183_v34 = vmul.f32 0.5, %v1147_v32  ;;  %2312 = vmatprep.subr.bf16.mxu1 %v1226_v22  ;;  %v1198_v38 = vmax.f32 %v1144_v24, %v1182_v31  ;;  %v1276_v10 = vpop.permute.xlu1 %1275 }
 0x2ff   : > { %v1201_v36 = vmax.f32 %v1155_v28, %v1185_v33 }
 0x300   : > { %v1199_v39 = vmax.f32 %v1147_v32, %v1183_v34  ;;  %v2304_v40 = vpop.f32.mrb[28].mxu0 }
 0x301   : > { %v1168_v41 = vadd.f32 %v2304_v40, %v1022_v37  ;;  %v1159_v42 = vpop.f32.mrb[29].mxu0  ;;  %2313 = vmatpush3.bf16.msra.mxu1 %v1226_v22  ;;  %v1228_v43 = vpack.c.bf16 %v1201_v36, %v1200_v35  ;;  %v1281_v11 = vpop.permute.xlu0 %1280 }
 0x302   : > { %v1160_v45 = vadd.f32 %v1159_v42, %v1012_v23  ;;  %v2305_v46 = vpop.f32.mrb[30].mxu0  ;;  %v1227_v47 = vpack.c.bf16 %v1199_v39, %v1198_v38  ;;  %v1286_v15 = vpop.permute.xlu1 %1285 }
 0x303   : > { %v1188_v48 = vmul.f32 0.5, %v1168_v41  ;;  %v1171_v49 = vadd.f32 %v2305_v46, %v1027_v44  ;;  %v1162_v50 = vpop.f32.mrb[31].mxu0 }
 0x304   : > { %v1186_v51 = vmul.f32 0.5, %v1160_v45  ;;  %v1163_v52 = vadd.f32 %v1162_v50, %v1017_v30  ;;  %2314 = vmatprep.subr.bf16.mxu1 %v1227_v47 }
 0x305   : > { %v1189_v53 = vmul.f32 0.5, %v1171_v49  ;;  %2315 = vmatpush3.bf16.msra.mxu1 %v1227_v47  ;;  %v1204_v55 = vmax.f32 %v1168_v41, %v1188_v48  ;;  %v1291_v24 = vpop.permute.xlu0 %1290 }
 0x306   : > { %v1187_v54 = vmul.f32 0.5, %v1163_v52  ;;  %2316 = vmatprep.subr.bf16.mxu1 %v1228_v43  ;;  %v1202_v57 = vmax.f32 %v1160_v45, %v1186_v51  ;;  %v1296_v28 = vpop.permute.xlu1 %1295 }
 0x307   : > { %v1205_v56 = vmax.f32 %v1171_v49, %v1189_v53 }
 0x308   : > { %v1203_v58 = vmax.f32 %v1163_v52, %v1187_v54 }
 0x309   : > { %2317 = vmatpush3.bf16.msra.mxu1 %v1228_v43  ;;  %v1230_v59 = vpack.c.bf16 %v1205_v56, %v1204_v55  ;;  %v1301_v41 = vpop.permute.xlu0 %1300 }
 0x30a   : > { %v1229_v60 = vpack.c.bf16 %v1203_v58, %v1202_v57  ;;  %v1306_v45 = vpop.permute.xlu1 %1305 }
 0x30c   : > { %2318 = vmatprep.subr.bf16.mxu1 %v1229_v60 }
 0x30d   : > { %2319 = vmatpush3.bf16.msra.mxu1 %v1229_v60  ;;  %v1311_v55 = vpop.permute.xlu0 %1310 }
 0x30e   : > { %2320 = vmatprep.subr.bf16.mxu1 %v1230_v59 }
 0x311   : > { %2321 = vmatpush3.bf16.msra.mxu1 %v1230_v59 }
 0x314   : > { %2323 = vmatmul.mubr.bf16.vlgmr.msra.gmra.mrb[16].mxu1 %v2436_v61 }
 0x315   : > { %2326 = vmatprep.mubr.bf16.mxu1 %v2437_v62  ;;  %v1316_v62 = vpop.permute.xlu1 %1315 }
 0x31c   : > { %2327 = vmatmul.mubr.bf16.gmra.mrb[20].mxu1 %v2438_v63 }
 0x31d   : > { %2330 = vmatprep.mubr.bf16.mxu1 %v2439_v0 }
 0x324   : > { %2331 = vmatmul.mubr.bf16.gmra.mrb[24].mxu1 %v2440_v1 }
 0x325   : > { %2334 = vmatprep.mubr.bf16.mxu1 %v2441_v2 }
 0x32c   : > { %2335 = vmatmul.mubr.bf16.gmra.mrb[28].mxu1 %v2442_v3 }
 0x3e7   : > { %v2324_v12 = vpop.f32.mrb[16].mxu1 }
 0x3e8   : > { %v1419_v13 = vadd.f32 %v2324_v12, %v1261_v7  ;;  %v1410_v14 = vpop.f32.mrb[17].mxu1  ;;  %v1326_v12 = vpop.permute.xlu1 %1325 }
 0x3e9   : > { %v1411_v16 = vadd.f32 %v1410_v14, %v1251_v5  ;;  %v2325_v17 = vpop.f32.mrb[18].mxu1  ;;  %v1321_v5 = vpop.permute.xlu0 %1320 }
 0x3ea   : > { %v1475_v18 = vmul.f32 0.5, %v1419_v13  ;;  %v1422_v19 = vadd.f32 %v2325_v17, %v1266_v8  ;;  %v1413_v20 = vpop.f32.mrb[19].mxu1 }
 0x3eb   : > { %v1473_v21 = vmul.f32 0.5, %v1411_v16  ;;  %v1414_v22 = vadd.f32 %v1413_v20, %v1256_v6 }
 0x3ec   : > { %v1476_v23 = vmul.f32 0.5, %v1422_v19  ;;  %v1491_v26 = vmax.f32 %v1419_v13, %v1475_v18 }
 0x3ed   : > { %v1474_v25 = vmul.f32 0.5, %v1414_v22  ;;  %v1489_v29 = vmax.f32 %v1411_v16, %v1473_v21 }
 0x3ee   : > { %v1492_v27 = vmax.f32 %v1422_v19, %v1476_v23 }
 0x3ef   : > { %v1490_v30 = vmax.f32 %v1414_v22, %v1474_v25  ;;  %v2328_v31 = vpop.f32.mrb[20].mxu1 }
 0x3f0   : > { %v1435_v32 = vadd.f32 %v2328_v31, %v1281_v11  ;;  %v1426_v33 = vpop.f32.mrb[21].mxu1  ;;  %v1523_v34 = vpack.c.bf16 %v1492_v27, %v1491_v26  ;;  %v2446_v31 = vld [vmem:[%s2991_s3 + $0xd8] sm:$0xff]  }
 0x3f1   : > { %v1427_v35 = vadd.f32 %v1426_v33, %v1271_v9  ;;  %v2329_v36 = vpop.f32.mrb[22].mxu1  ;;  %v1522_v37 = vpack.c.bf16 %v1490_v30, %v1489_v29  ;;  %v2444_v29 = vld [vmem:[%s2991_s3 + $0xc8] sm:$0xff]   ;;  %v2445_v30 = vld [vmem:[%s2991_s3 + $0xd0] sm:$0xff]  }
 0x3f2   : > { %v1479_v38 = vmul.f32 0.5, %v1435_v32  ;;  %v1438_v39 = vadd.f32 %v2329_v36, %v1286_v15  ;;  %v1429_v40 = vpop.f32.mrb[23].mxu1  ;;  %v2448_v33 = vld [vmem:[%s2991_s3 + $0xe8] sm:$0xff]   ;;  %v2477_v36 = vmov 0.0  }
 0x3f3   : > { %v1477_v42 = vmul.f32 0.5, %v1427_v35  ;;  %v1430_v43 = vadd.f32 %v1429_v40, %v1276_v10  ;;  %2338 = vmatprep.subr.bf16.mxu0 %v1522_v37  ;;  %2370 = vmatprep.subr.bf16.mxu1 %v2477_v36 }
 0x3f4   : > { %v1480_v44 = vmul.f32 0.5, %v1438_v39  ;;  %2339 = vmatpush3.bf16.msra.mxu0 %v1522_v37  ;;  %v1495_v47 = vmax.f32 %v1435_v32, %v1479_v38  ;;  %v2447_v32 = vld [vmem:[%s2991_s3 + $0xe0] sm:$0xff]   ;;  %2386 = vmatprep.mubr.msk.bf16.mxu1 %vm2478_vm1, %v2477_v36  ;;  %v1550_v37 = vpop.permute.xlu0 %1549  ;;  %v1555_v38 = vpop.permute.xlu1 %1554 }
 0x3f5   : > { %v1478_v46 = vmul.f32 0.5, %v1430_v43  ;;  %2340 = vmatprep.subr.bf16.mxu0 %v1523_v34  ;;  %v1493_v49 = vmax.f32 %v1427_v35, %v1477_v42  ;;  %v2450_v35 = vld [vmem:[%s2991_s3 + $0xf8] sm:$0xff]  }
 0x3f6   : > { %v1496_v48 = vmax.f32 %v1438_v39, %v1480_v44 }
 0x3f7   : > { %v1494_v50 = vmax.f32 %v1430_v43, %v1478_v46  ;;  %v2332_v51 = vpop.f32.mrb[24].mxu1 }
 0x3f8   : > { %v1451_v52 = vadd.f32 %v2332_v51, %v1301_v41  ;;  %v1442_v53 = vpop.f32.mrb[25].mxu1  ;;  %2341 = vmatpush3.bf16.msra.mxu0 %v1523_v34  ;;  %v1525_v54 = vpack.c.bf16 %v1496_v48, %v1495_v47  ;;  %v2449_v34 = vld [vmem:[%s2991_s3 + $0xf0] sm:$0xff]   ;;  %v1560_v39 = vpop.permute.xlu0 %1559 }
 0x3f9   : > { %v1443_v56 = vadd.f32 %v1442_v53, %v1291_v24  ;;  %v2333_v57 = vpop.f32.mrb[26].mxu1  ;;  %v1524_v58 = vpack.c.bf16 %v1494_v50, %v1493_v49  ;;  %v1565_v40 = vpop.permute.xlu1 %1564 }
 0x3fa   : > { %v1483_v59 = vmul.f32 0.5, %v1451_v52  ;;  %v1454_v60 = vadd.f32 %v2333_v57, %v1306_v45  ;;  %v1445_v61 = vpop.f32.mrb[27].mxu1 }
 0x3fb   : > { %v1481_v63 = vmul.f32 0.5, %v1443_v56  ;;  %v1446_v0 = vadd.f32 %v1445_v61, %v1296_v28  ;;  %2342 = vmatprep.subr.bf16.mxu0 %v1524_v58 }
 0x3fc   : > { %v1484_v1 = vmul.f32 0.5, %v1454_v60  ;;  %2343 = vmatpush3.bf16.msra.mxu0 %v1524_v58  ;;  %v1499_v3 = vmax.f32 %v1451_v52, %v1483_v59  ;;  %v1570_v41 = vpop.permute.xlu0 %1569 }
 0x3fd   : > { %v1482_v2 = vmul.f32 0.5, %v1446_v0  ;;  %2344 = vmatprep.subr.bf16.mxu0 %v1525_v54  ;;  %v1497_v6 = vmax.f32 %v1443_v56, %v1481_v63  ;;  %v1575_v42 = vpop.permute.xlu1 %1574 }
 0x3fe   : > { %v1500_v4 = vmax.f32 %v1454_v60, %v1484_v1 }
 0x3ff   : > { %v1498_v7 = vmax.f32 %v1446_v0, %v1482_v2  ;;  %v2336_v8 = vpop.f32.mrb[28].mxu1 }
 0x400   : > { %v1467_v9 = vadd.f32 %v2336_v8, %v1321_v5  ;;  %v1458_v10 = vpop.f32.mrb[29].mxu1  ;;  %2345 = vmatpush3.bf16.msra.mxu0 %v1525_v54  ;;  %v1527_v11 = vpack.c.bf16 %v1500_v4, %v1499_v3  ;;  %v1580_v43 = vpop.permute.xlu0 %1579 }
 0x401   : > { %v1459_v13 = vadd.f32 %v1458_v10, %v1311_v55  ;;  %v2337_v14 = vpop.f32.mrb[30].mxu1  ;;  %v1526_v15 = vpack.c.bf16 %v1498_v7, %v1497_v6  ;;  %v1585_v47 = vpop.permute.xlu1 %1584 }
 0x402   : > { %v1487_v16 = vmul.f32 0.5, %v1467_v9  ;;  %v1470_v17 = vadd.f32 %v2337_v14, %v1326_v12  ;;  %v1461_v18 = vpop.f32.mrb[31].mxu1 }
 0x403   : > { %v1485_v19 = vmul.f32 0.5, %v1459_v13  ;;  %v1462_v20 = vadd.f32 %v1461_v18, %v1316_v62  ;;  %2346 = vmatprep.subr.bf16.mxu0 %v1526_v15 }
 0x404   : > { %v1488_v21 = vmul.f32 0.5, %v1470_v17  ;;  %2347 = vmatpush3.bf16.msra.mxu0 %v1526_v15  ;;  %v1503_v23 = vmax.f32 %v1467_v9, %v1487_v16  ;;  %v1590_v56 = vpop.permute.xlu0 %1589 }
 0x405   : > { %v1486_v22 = vmul.f32 0.5, %v1462_v20  ;;  %2348 = vmatprep.subr.bf16.mxu0 %v1527_v11  ;;  %v1501_v25 = vmax.f32 %v1459_v13, %v1485_v19  ;;  %v1595_v60 = vpop.permute.xlu1 %1594 }
 0x406   : > { %v1504_v24 = vmax.f32 %v1470_v17, %v1488_v21 }
 0x407   : > { %v1502_v26 = vmax.f32 %v1462_v20, %v1486_v22 }
 0x408   : > { %2349 = vmatpush3.bf16.msra.mxu0 %v1527_v11  ;;  %v1529_v27 = vpack.c.bf16 %v1504_v24, %v1503_v23  ;;  %v1600_v9 = vpop.permute.xlu0 %1599 }
 0x409   : > { %v1528_v28 = vpack.c.bf16 %v1502_v26, %v1501_v25  ;;  %v1605_v13 = vpop.permute.xlu1 %1604 }
 0x40b   : > { %2350 = vmatprep.subr.bf16.mxu0 %v1528_v28 }
 0x40c   : > { %2351 = vmatpush3.bf16.msra.mxu0 %v1528_v28  ;;  %v1610_v23 = vpop.permute.xlu0 %1609 }
 0x40d   : > { %2352 = vmatprep.subr.bf16.mxu0 %v1529_v27 }
 0x410   : > { %2353 = vmatpush3.bf16.msra.mxu0 %v1529_v27 }
 0x413   : > { %2355 = vmatmul.mubr.bf16.vlgmr.msra.gmra.mrb[32].mxu0 %v2444_v29 }
 0x414   : > { %2358 = vmatprep.mubr.bf16.mxu0 %v2445_v30  ;;  %v1615_v30 = vpop.permute.xlu1 %1614 }
 0x41b   : > { %2359 = vmatmul.mubr.bf16.gmra.mrb[36].mxu0 %v2446_v31 }
 0x41c   : > { %2362 = vmatprep.mubr.bf16.mxu0 %v2447_v32 }
 0x423   : > { %2363 = vmatmul.mubr.bf16.gmra.mrb[40].mxu0 %v2448_v33 }
 0x424   : > { %2366 = vmatprep.mubr.bf16.mxu0 %v2449_v34 }
 0x42b   : > { %2367 = vmatmul.mubr.bf16.gmra.mrb[44].mxu0 %v2450_v35 }
 0x4e6   : > { %v2356_v44 = vpop.f32.mrb[32].mxu0 }
 0x4e7   : > { %v1718_v45 = vadd.f32 %v2356_v44, %v1560_v39  ;;  %v1709_v46 = vpop.f32.mrb[33].mxu0 }
 0x4e8   : > { %v1710_v48 = vadd.f32 %v1709_v46, %v1550_v37  ;;  %v2357_v49 = vpop.f32.mrb[34].mxu0 }
 0x4e9   : > { %v1774_v50 = vmul.f32 0.5, %v1718_v45  ;;  %v1721_v51 = vadd.f32 %v2357_v49, %v1565_v40  ;;  %v1712_v52 = vpop.f32.mrb[35].mxu0 }
 0x4ea   : > { %v1772_v53 = vmul.f32 0.5, %v1710_v48  ;;  %v1713_v54 = vadd.f32 %v1712_v52, %v1555_v38  ;;  %v1620_v38 = vpop.permute.xlu0 %1619 }
 0x4eb   : > { %v1775_v55 = vmul.f32 0.5, %v1721_v51  ;;  %v1790_v58 = vmax.f32 %v1718_v45, %v1774_v50  ;;  %v1625_v45 = vpop.permute.xlu1 %1624 }
 0x4ec   : > { %v1773_v57 = vmul.f32 0.5, %v1713_v54  ;;  %v1788_v61 = vmax.f32 %v1710_v48, %v1772_v53 }
 0x4ed   : > { %v1791_v59 = vmax.f32 %v1721_v51, %v1775_v55 }
 0x4ee   : > { %v1789_v62 = vmax.f32 %v1713_v54, %v1773_v57  ;;  %v2360_v63 = vpop.f32.mrb[36].mxu0 }
 0x4ef   : > { %v1807_v0 = vpack.c.bf16 %v1791_v59, %v1790_v58  ;;  %v1734_v1 = vadd.f32 %v2360_v63, %v1580_v43  ;;  %v1725_v2 = vpop.f32.mrb[37].mxu0  ;;  %v1819_v63 = vpop.permute.xlu0 %1818 }
 0x4f0   : > { %v1806_v3 = vpack.c.bf16 %v1789_v62, %v1788_v61  ;;  %v1726_v4 = vadd.f32 %v1725_v2, %v1570_v41  ;;  %v2361_v5 = vpop.f32.mrb[38].mxu0  ;;  %v2451_v62 = vld [vmem:[%s2993_s5] sm:$0xff]  }
 0x4f1   : > { %v1778_v6 = vmul.f32 0.5, %v1734_v1  ;;  %v1737_v7 = vadd.f32 %v2361_v5, %v1585_v47  ;;  %v1728_v8 = vpop.f32.mrb[39].mxu0 }
 0x4f2   : > { %v1776_v10 = vmul.f32 0.5, %v1726_v4  ;;  %v1729_v11 = vadd.f32 %v1728_v8, %v1575_v42  ;;  %2371 = vmatpush3.bf16.msra.mxu1 %v1806_v3  ;;  %v1824_v3 = vpop.permute.xlu1 %1823 }
 0x4f3   : > { %v1779_v12 = vmul.f32 0.5, %v1737_v7  ;;  %2372 = vmatprep.subr.bf16.mxu1 %v2477_v36  ;;  %v1794_v15 = vmax.f32 %v1734_v1, %v1778_v6 }
 0x4f4   : > { %v1777_v14 = vmul.f32 0.5, %v1729_v11  ;;  %v1792_v17 = vmax.f32 %v1726_v4, %v1776_v10 }
 0x4f5   : > { %v1795_v16 = vmax.f32 %v1737_v7, %v1779_v12 }
 0x4f6   : > { %v1793_v18 = vmax.f32 %v1729_v11, %v1777_v14  ;;  %v2364_v19 = vpop.f32.mrb[40].mxu0  ;;  %2373 = vmatpush3.bf16.msra.mxu1 %v1807_v0 }
 0x4f7   : > { %v1809_v20 = vpack.c.bf16 %v1795_v16, %v1794_v15  ;;  %v1750_v21 = vadd.f32 %v2364_v19, %v1600_v9  ;;  %v1741_v22 = vpop.f32.mrb[41].mxu0  ;;  %2374 = vmatprep.subr.bf16.mxu1 %v2477_v36 }
 0x4f8   : > { %v1808_v24 = vpack.c.bf16 %v1793_v18, %v1792_v17  ;;  %v1742_v25 = vadd.f32 %v1741_v22, %v1590_v56  ;;  %v2365_v26 = vpop.f32.mrb[42].mxu0 }
 0x4f9   : > { %v1782_v27 = vmul.f32 0.5, %v1750_v21  ;;  %v1753_v28 = vadd.f32 %v2365_v26, %v1605_v13  ;;  %v1744_v29 = vpop.f32.mrb[43].mxu0 }
 0x4fa   : > { %v1780_v31 = vmul.f32 0.5, %v1742_v25  ;;  %v1745_v32 = vadd.f32 %v1744_v29, %v1595_v60  ;;  %2375 = vmatpush3.bf16.msra.mxu1 %v1808_v24 }
 0x4fb   : > { %v1783_v33 = vmul.f32 0.5, %v1753_v28  ;;  %2376 = vmatprep.subr.bf16.mxu1 %v2477_v36  ;;  %v1798_v35 = vmax.f32 %v1750_v21, %v1782_v27 }
 0x4fc   : > { %v1781_v34 = vmul.f32 0.5, %v1745_v32  ;;  %v1796_v39 = vmax.f32 %v1742_v25, %v1780_v31 }
 0x4fd   : > { %v1799_v37 = vmax.f32 %v1753_v28, %v1783_v33 }
 0x4fe   : > { %v1797_v40 = vmax.f32 %v1745_v32, %v1781_v34  ;;  %v2368_v41 = vpop.f32.mrb[44].mxu0  ;;  %2377 = vmatpush3.bf16.msra.mxu1 %v1809_v20 }
 0x4ff   : > { %v1811_v42 = vpack.c.bf16 %v1799_v37, %v1798_v35  ;;  %v1766_v43 = vadd.f32 %v2368_v41, %v1620_v38  ;;  %v1757_v44 = vpop.f32.mrb[45].mxu0  ;;  %2378 = vmatprep.subr.bf16.mxu1 %v2477_v36 }
 0x500   : > { %v1810_v46 = vpack.c.bf16 %v1797_v40, %v1796_v39  ;;  %v1758_v47 = vadd.f32 %v1757_v44, %v1610_v23  ;;  %v2369_v48 = vpop.f32.mrb[46].mxu0 }
 0x501   : > { %v1786_v49 = vmul.f32 0.5, %v1766_v43  ;;  %v1769_v50 = vadd.f32 %v2369_v48, %v1625_v45  ;;  %v1760_v51 = vpop.f32.mrb[47].mxu0 }
 0x502   : > { %v1784_v52 = vmul.f32 0.5, %v1758_v47  ;;  %v1761_v53 = vadd.f32 %v1760_v51, %v1615_v30  ;;  %2379 = vmatpush3.bf16.msra.mxu1 %v1810_v46 }
 0x503   : > { %v1787_v54 = vmul.f32 0.5, %v1769_v50  ;;  %2380 = vmatprep.subr.bf16.mxu1 %v2477_v36  ;;  %v1802_v56 = vmax.f32 %v1766_v43, %v1786_v49 }
 0x504   : > { %v1785_v55 = vmul.f32 0.5, %v1761_v53  ;;  %v1800_v58 = vmax.f32 %v1758_v47, %v1784_v52 }
 0x505   : > { %v1803_v57 = vmax.f32 %v1769_v50, %v1787_v54 }
 0x506   : > { %v1801_v59 = vmax.f32 %v1761_v53, %v1785_v55  ;;  %2381 = vmatpush3.bf16.msra.mxu1 %v1811_v42 }
 0x507   : > { %v1813_v60 = vpack.c.bf16 %v1803_v57, %v1802_v56  ;;  %2382 = vmatprep.subr.bf16.mxu1 %v2477_v36 }
 0x508   : > { %v1812_v61 = vpack.c.bf16 %v1801_v59, %v1800_v58 }
 0x50a   : > { %2383 = vmatpush3.bf16.msra.mxu1 %v1812_v61 }
 0x50b   : > { %2384 = vmatprep.subr.bf16.mxu1 %v2477_v36 }
 0x50e   : > { %2385 = vmatpush3.bf16.msra.mxu1 %v1813_v60 }
 0x511   : > { %2387 = vmatmul.mubr.bf16.vlgmr.msra.gmra.mrb[32].mxu1 %v2451_v62 }
 0x5e3   : > { %1881 = sbr.rel (!%p2544_p4) target bundleno = 1522 (0x5f2), region = 52 }
 0x5e4   : > { %v1866_v0 = vpop.f32.mrb[32].mxu1 }
 0x5e5   : > { %v1867_v1 = vadd.f32 %v1866_v0, %v1819_v63  ;;  %v2388_v2 = vpop.f32.mrb[33].mxu1 }
 0x5e6   : > { %v1869_v4 = vpop.f32.mrb[34].mxu1 }
 0x5e7   : > { %1873 = vst [vmem:[%s265_s26] sm:$0xff] %v1867_v1  ;;  %v1870_v5 = vadd.f32 %v1869_v4, %v1824_v3  ;;  %v2389_v6 = vpop.f32.mrb[35].mxu1 }
 0x5e9   : > { %1874 = vst [vmem:[%s265_s26 + $0x8] sm:$0xff] %v1870_v5 }
 0x5ee   : > { %v1913_v36 = vld [vmem:[%s265_s26] sm:$0xff] }
 0x5ef   : > { %1914 = vst [vmem:[%s1883_s10] sm:$0xff] %v1913_v36 }
 0x5f0   : > { %v1915_v7 = vld [vmem:[%s265_s26 + $0x8] sm:$0xff] }
 0x5f1   : > { %1916 = vst [vmem:[%s1883_s10 + $0x10] sm:$0xff] %v1915_v7 }
 0x5f2 PF: > { %p14_p8 = scmp.ge.s32.totalorder %s2534_s28, 4   ;;  %s2997_s24 = smov %s2470_s25 }
 0x5f3   : > { %s2998_s25 = smov %s2542_s8  ;;  %s2999_s26 = smov %s2534_s28 }
 0x5f4   :  { %16 = sbr.rel (!%p14_p8) target bundleno = 2 (0x2), region = 122 }

</bundles_post_ra>
